<compile_context>
chip_gen: v7x
topology: tpu7x:2x2x1
jax: 0.10.0
libtpu: 0.0.40
codegen_flags: <defaults>
</compile_context>

<pallas_src>
import math

import numpy as np

import jax
import jax.numpy as jnp
from jax import lax
from jax.experimental import pallas as pl
from jax.experimental.pallas import tpu as pltpu

# ----- config (small shapes consistent with the module) -----
INPUT_SIZE = 4
HIDDEN = 32            # d_model
NHEAD = 4
NUM_LAYERS = 2
DIM_FF = 64            # dim_feedforward
N_FORECASTS = 10
NF_PAD = 128           # lane-dense padded output width
SEQ = 8
BATCH = 2
HEAD_DIM = HIDDEN // NHEAD
EPS = 1e-5
NEG_INF = -1e30

# ----- packed bias/layernorm slab layout (rows of a (BIAS_ROWS_PAD,128) f32) -----
ROWS_PER_LAYER = 8
R_QKV_B, R_ATTN_OB, R_N1W, R_N1B, R_FF1B, R_FF2B, R_N2W, R_N2B = range(8)
R_H1B = NUM_LAYERS * ROWS_PER_LAYER      # 16
R_H2B = R_H1B + 1                        # 17
BIAS_ROWS_PAD = 24                       # pad rows to a multiple of 8


def _layer_norm(x, w, b):
    mu = jnp.mean(x, axis=-1, keepdims=True)
    var = jnp.mean((x - mu) ** 2, axis=-1, keepdims=True)
    return (x - mu) * lax.rsqrt(var + EPS) * w + b


def transformer_kernel(
    x_ref,        # (BS, F)        f32   BS = TB * SEQ rows for this grid step
    pe_ref,       # (BS, D)        f32   pos-enc + input-proj bias, pre-tiled
    mask_ref,     # (BS, BS)       f32   additive 0 / -1e30 batch-block mask
    pool_ref,     # (TB, BS)       bf16  AdaptiveAvgPool1d(1) matrix
    bias_ref,     # (24, 128)      f32   packed biases / layernorm params
    w_inp_ref,    # (F, D)         bf16
    w_qkv_ref,    # (L, D, 3D)     bf16  (Q block pre-scaled by 1/sqrt(hd))
    w_ao_ref,     # (L, H, hd, D)  bf16  out-proj weights, head-major
    w_ff1_ref,    # (L, D, FF)     bf16
    w_ff2_ref,    # (L, FF, D)     bf16
    w_h1_ref,     # (D, D)         bf16
    w_h2_ref,     # (D, 128)       bf16  zero-padded beyond n_forecasts
    o_ref,        # (TB, 128)      f32
):
    D, hd, H, FF = HIDDEN, HEAD_DIM, NHEAD, DIM_FF
    BS = x_ref.shape[0]
    TB = BS // SEQ

    # input projection (bf16 MXU, f32 accum) + positional enc (+ input bias)
    x16 = x_ref[...].astype(jnp.bfloat16)
    h = jnp.dot(x16, w_inp_ref[...], preferred_element_type=jnp.float32)
    h = h + pe_ref[...]                                           # (BS, D) f32

    if TB > 1:
        mask = mask_ref[...]          # only needed when batches share the tile

    # post-norm TransformerEncoderLayer x NUM_LAYERS (relu activation)
    for l in range(NUM_LAYERS):
        r = l * ROWS_PER_LAYER
        qkv_b = bias_ref[r + R_QKV_B:r + R_QKV_B + 1, :3 * D]
        ob    = bias_ref[r + R_ATTN_OB:r + R_ATTN_OB + 1, :D]
        n1w   = bias_ref[r + R_N1W:r + R_N1W + 1, :D]
        n1b   = bias_ref[r + R_N1B:r + R_N1B + 1, :D]
        f1b   = bias_ref[r + R_FF1B:r + R_FF1B + 1, :FF]
        f2b   = bias_ref[r + R_FF2B:r + R_FF2B + 1, :D]
        n2w   = bias_ref[r + R_N2W:r + R_N2W + 1, :D]
        n2b   = bias_ref[r + R_N2B:r + R_N2B + 1, :D]

        # fused QKV projection (1/sqrt(hd) already folded into Q weights/bias)
        qkv = jnp.dot(h.astype(jnp.bfloat16), w_qkv_ref[l],
                      preferred_element_type=jnp.float32) + qkv_b  # (BS, 3D)
        qkv16 = qkv.astype(jnp.bfloat16)

        # per-head attention: lane slices feed the MXU directly (no repack);
        # head merge is folded into the out-projection (sum of per-head dots)
        attn = ob
        for hh in range(H):
            q_h = qkv16[:, hh * hd:(hh + 1) * hd]
            k_h = qkv16[:, D + hh * hd:D + (hh + 1) * hd]
            v_h = qkv16[:, 2 * D + hh * hd:2 * D + (hh + 1) * hd]
            s = lax.dot_general(q_h, k_h, (((1,), (1,)), ((), ())),
                                preferred_element_type=jnp.float32)  # (BS,BS)
            if TB > 1:
                s = s + mask                     # block cross-batch attention
            # keep -max stabilization: one cheap lane reduce, guards overflow
            s = s - jnp.max(s, axis=-1, keepdims=True)
            p = jnp.exp(s)
            p = p * pl.reciprocal(jnp.sum(p, axis=-1, keepdims=True),
                                  approx=True)
            ctx = jnp.dot(p.astype(jnp.bfloat16), v_h,
                          preferred_element_type=jnp.float32)        # (BS,hd)
            attn = attn + jnp.dot(ctx.astype(jnp.bfloat16), w_ao_ref[l, hh],
                                  preferred_element_type=jnp.float32)

        h = _layer_norm(h + attn, n1w, n1b)

        # feed-forward (relu)
        ff = jnp.dot(h.astype(jnp.bfloat16), w_ff1_ref[l],
                     preferred_element_type=jnp.float32)
        ff = jnp.maximum(ff + f1b, 0.0)
        ff = jnp.dot(ff.astype(jnp.bfloat16), w_ff2_ref[l],
                     preferred_element_type=jnp.float32) + f2b
        h = _layer_norm(h + ff, n2w, n2b)

    # AdaptiveAvgPool1d(1) over the sequence axis, per batch row (tiny MXU op)
    pooled = jnp.dot(pool_ref[...], h.astype(jnp.bfloat16),
                     preferred_element_type=jnp.float32)              # (TB, D)

    # output head: Linear -> ReLU -> Linear (zero-padded to NF_PAD lanes)
    h1b = bias_ref[R_H1B:R_H1B + 1, :D]
    h2b = bias_ref[R_H2B:R_H2B + 1, :]
    o1 = jnp.dot(pooled.astype(jnp.bfloat16), w_h1_ref[...],
                 preferred_element_type=jnp.float32)
    o1 = jnp.maximum(o1 + h1b, 0.0)
    out = jnp.dot(o1.astype(jnp.bfloat16), w_h2_ref[...],
                  preferred_element_type=jnp.float32) + h2b           # (TB,128)

    o_ref[...] = out.astype(o_ref.dtype)


def make_positional_encoding(seq_len, d_model):
    pos = jnp.arange(seq_len, dtype=jnp.float32)[:, None]
    div = jnp.exp(jnp.arange(0, d_model, 2, dtype=jnp.float32)
                  * -(math.log(10000.0) / d_model))
    pe = jnp.zeros((seq_len, d_model), jnp.float32)
    pe = pe.at[:, 0::2].set(jnp.sin(pos * div))
    pe = pe.at[:, 1::2].set(jnp.cos(pos * div))
    return pe


def init_params(key):
    key_box = [key]

    def nxt():
        key_box[0], sub = jax.random.split(key_box[0])
        return sub

    def w(shape, scale=0.1):
        return jax.random.normal(nxt(), shape, jnp.float32) * scale

    qscale = 1.0 / math.sqrt(HEAD_DIM)
    p = {}

    # input projection (x @ W convention); its bias is folded into pe_b
    p["w_inp"] = w((INPUT_SIZE, HIDDEN)).astype(jnp.bfloat16)
    inp_b = w((HIDDEN,), 0.02)
    p["pe_b"] = make_positional_encoding(SEQ, HIDDEN) + inp_b[None, :]  # (S,D)

    # stacked encoder-layer matmul weights (bf16); attention scale folded
    # into the Q block BEFORE the bf16 cast.
    # NOTE: if real trained weights are loaded, apply the same qscale fold.
    qkv_w = w((NUM_LAYERS, HIDDEN, 3 * HIDDEN))
    qkv_w = qkv_w.at[:, :, :HIDDEN].multiply(qscale)
    p["w_qkv"] = qkv_w.astype(jnp.bfloat16)
    # out-proj weights pre-split head-major: (L, H, hd, D)
    p["w_ao"] = (w((NUM_LAYERS, HIDDEN, HIDDEN))
                 .reshape(NUM_LAYERS, NHEAD, HEAD_DIM, HIDDEN)
                 .astype(jnp.bfloat16))
    p["w_ff1"] = w((NUM_LAYERS, HIDDEN, DIM_FF)).astype(jnp.bfloat16)
    p["w_ff2"] = w((NUM_LAYERS, DIM_FF, HIDDEN)).astype(jnp.bfloat16)

    # output head; final layer zero-padded to NF_PAD lanes (lane-dense stores)
    p["w_h1"] = w((HIDDEN, HIDDEN)).astype(jnp.bfloat16)
    h2w = w((HIDDEN, N_FORECASTS))
    p["w_h2"] = (jnp.zeros((HIDDEN, NF_PAD), jnp.float32)
                 .at[:, :N_FORECASTS].set(h2w)).astype(jnp.bfloat16)

    # ----- packed lane-dense bias / layernorm slab (f32) -----
    qkv_b = w((NUM_LAYERS, 3 * HIDDEN), 0.02)
    qkv_b = qkv_b.at[:, :HIDDEN].multiply(qscale)     # fold scale into Q bias
    attn_ob = w((NUM_LAYERS, HIDDEN), 0.02)
    ff1b = w((NUM_LAYERS, DIM_FF), 0.02)
    ff2b = w((NUM_LAYERS, HIDDEN), 0.02)
    h1b = w((HIDDEN,), 0.02)
    h2b = w((N_FORECASTS,), 0.02)

    slab = jnp.zeros((BIAS_ROWS_PAD, NF_PAD), jnp.float32)
    for l in range(NUM_LAYERS):
        r = l * ROWS_PER_LAYER
        slab = slab.at[r + R_QKV_B, :3 * HIDDEN].set(qkv_b[l])
        slab = slab.at[r + R_ATTN_OB, :HIDDEN].set(attn_ob[l])
        slab = slab.at[r + R_N1W, :HIDDEN].set(1.0)      # LayerNorm1 weight
        # R_N1B row stays zero                            # LayerNorm1 bias
        slab = slab.at[r + R_FF1B, :DIM_FF].set(ff1b[l])
        slab = slab.at[r + R_FF2B, :HIDDEN].set(ff2b[l])
        slab = slab.at[r + R_N2W, :HIDDEN].set(1.0)      # LayerNorm2 weight
        # R_N2B row stays zero                            # LayerNorm2 bias
    slab = slab.at[R_H1B, :HIDDEN].set(h1b)
    slab = slab.at[R_H2B, :N_FORECASTS].set(h2b)
    p["bias"] = slab
    return p


WEIGHT_ORDER = ["bias", "w_inp", "w_qkv", "w_ao", "w_ff1", "w_ff2",
                "w_h1", "w_h2"]


def _full_spec(a):
    zeros = (0,) * a.ndim
    return pl.BlockSpec(a.shape, lambda b, _z=zeros: _z)


def _num_grid_steps(batch):
    # v7x has 2 TensorCores per chip: give each a "parallel" grid step.
    # v5e/v6e have 1 TC: keep a single step (per-step overhead dominates
    # this microsecond-scale kernel).
    try:
        kind = jax.devices()[0].device_kind.lower()
    except Exception:
        kind = ""
    if "v7" in kind and batch >= 2 and batch % 2 == 0:
        return 2
    return 1


@jax.jit
def forward(x, params):
    B, S, F = x.shape
    steps = _num_grid_steps(B)
    TB = B // steps
    BS = TB * S

    x3 = x.reshape(steps, BS, F)                 # rows ordered (batch, seq)

    # constants built once per trace (tiny): pre-tiled pos-enc, additive
    # batch-block mask, and the average-pooling matrix (bf16 matmul operand).
    pe = jnp.tile(params["pe_b"], (TB, 1))                         # (BS, D)
    row_b = np.arange(BS) // S
    mask = jnp.asarray(
        np.where(row_b[:, None] == row_b[None, :], 0.0, NEG_INF),
        jnp.float32)                                               # (BS, BS)
    pool = jnp.asarray(
        np.where(np.arange(TB)[:, None] == row_b[None, :], 1.0 / S, 0.0),
        jnp.bfloat16)                                              # (TB, BS)

    args = [x3, pe, mask, pool] + [params[k] for k in WEIGHT_ORDER]
    in_specs = ([pl.BlockSpec((None, BS, F), lambda b: (b, 0, 0)),
                 _full_spec(pe), _full_spec(mask), _full_spec(pool)]
                + [_full_spec(params[k]) for k in WEIGHT_ORDER])

    out = pl.pallas_call(
        transformer_kernel,
        out_shape=jax.ShapeDtypeStruct((steps, TB, NF_PAD), jnp.float32),
        grid=(steps,),
        in_specs=in_specs,
        out_specs=pl.BlockSpec((None, TB, NF_PAD), lambda b: (b, 0, 0)),
        compiler_params=pltpu.CompilerParams(
            dimension_semantics=("parallel",)),
    )(*args)

    # match torch: out.unsqueeze(-1) -> (B, n_forecasts, 1); drop lane padding
    return out.reshape(B, NF_PAD)[:, :N_FORECASTS, None]


if __name__ == "__main__":
    key = jax.random.PRNGKey(0)
    pkey, xkey = jax.random.split(key)
    params = init_params(pkey)
    x = jax.random.normal(xkey, (BATCH, SEQ, INPUT_SIZE), jnp.float32)

    out = forward(x, params)
    jax.block_until_ready(out)

    assert out.shape == (BATCH, N_FORECASTS, 1), out.shape
    assert bool(jnp.all(jnp.isfinite(out)))
    print("KERNEL_OK")
</pallas_src>

<mosaic_0001>
module attributes {stable_mosaic.version = 11 : i64} {
  func.func @transformer_kernel(%arg0: i32, %arg1: memref<1x16x4xf32, #tpu.memory_space<vmem>>, %arg2: memref<16x32xf32, #tpu.memory_space<vmem>>, %arg3: memref<16x16xf32, #tpu.memory_space<vmem>>, %arg4: memref<2x16xbf16, #tpu.memory_space<vmem>>, %arg5: memref<24x128xf32, #tpu.memory_space<vmem>>, %arg6: memref<4x32xbf16, #tpu.memory_space<vmem>>, %arg7: memref<2x32x96xbf16, #tpu.memory_space<vmem>>, %arg8: memref<2x4x8x32xbf16, #tpu.memory_space<vmem>>, %arg9: memref<2x32x64xbf16, #tpu.memory_space<vmem>>, %arg10: memref<2x64x32xbf16, #tpu.memory_space<vmem>>, %arg11: memref<32x32xbf16, #tpu.memory_space<vmem>>, %arg12: memref<32x128xbf16, #tpu.memory_space<vmem>>, %arg13: memref<1x2x128xf32, #tpu.memory_space<vmem>>) attributes {dimension_semantics = [#tpu.dimension_semantics<parallel>], iteration_bounds = array<i64: 1>, scalar_prefetch = 0 : i64, scratch_operands = 0 : i64, tpu.core_type = #tpu.core_type<tc>, window_params = [{transform_indices = @transform_0, window_bounds = array<i64: 1, 16, 4>}, {pipeline_mode = #tpu.pipeline_mode<synchronous>, transform_indices = @transform_1, window_bounds = array<i64: 16, 32>}, {pipeline_mode = #tpu.pipeline_mode<synchronous>, transform_indices = @transform_2, window_bounds = array<i64: 16, 16>}, {pipeline_mode = #tpu.pipeline_mode<synchronous>, transform_indices = @transform_3, window_bounds = array<i64: 2, 16>}, {pipeline_mode = #tpu.pipeline_mode<synchronous>, transform_indices = @transform_4, window_bounds = array<i64: 24, 128>}, {pipeline_mode = #tpu.pipeline_mode<synchronous>, transform_indices = @transform_5, window_bounds = array<i64: 4, 32>}, {pipeline_mode = #tpu.pipeline_mode<synchronous>, transform_indices = @transform_6, window_bounds = array<i64: 2, 32, 96>}, {pipeline_mode = #tpu.pipeline_mode<synchronous>, transform_indices = @transform_7, window_bounds = array<i64: 2, 4, 8, 32>}, {pipeline_mode = #tpu.pipeline_mode<synchronous>, transform_indices = @transform_8, window_bounds = array<i64: 2, 32, 64>}, {pipeline_mode = #tpu.pipeline_mode<synchronous>, transform_indices = @transform_9, window_bounds = array<i64: 2, 64, 32>}, {pipeline_mode = #tpu.pipeline_mode<synchronous>, transform_indices = @transform_10, window_bounds = array<i64: 32, 32>}, {pipeline_mode = #tpu.pipeline_mode<synchronous>, transform_indices = @transform_11, window_bounds = array<i64: 32, 128>}, {transform_indices = @transform_12, window_bounds = array<i64: 1, 2, 128>}]} {
    %c0 = arith.constant 0 : index
    %c0_0 = arith.constant 0 : index
    %c0_1 = arith.constant 0 : index
    %0 = vector.load %arg1[%c0, %c0_0, %c0_1] : memref<1x16x4xf32, #tpu.memory_space<vmem>>, vector<1x16x4xf32>
    %1 = vector.shape_cast %0 : vector<1x16x4xf32> to vector<16x4xf32>
    %2 = arith.truncf %1 : vector<16x4xf32> to vector<16x4xbf16>
    %c0_2 = arith.constant 0 : index
    %c0_3 = arith.constant 0 : index
    %3 = vector.load %arg6[%c0_2, %c0_3] : memref<4x32xbf16, #tpu.memory_space<vmem>>, vector<4x32xbf16>
    %cst = arith.constant dense<0.000000e+00> : vector<16x32xf32>
    %4 = tpu.matmul %2, %3, %cst {dimension_numbers = #tpu.dot_dimension_numbers<[1], [0], [0], [1], [0, 0, 1, 1], [], []>} : vector<16x4xbf16>, vector<4x32xbf16>, vector<16x32xf32> -> vector<16x32xf32>
    %c0_4 = arith.constant 0 : index
    %c0_5 = arith.constant 0 : index
    %5 = vector.load %arg2[%c0_4, %c0_5] : memref<16x32xf32, #tpu.memory_space<vmem>>, vector<16x32xf32>
    %6 = arith.addf %4, %5 : vector<16x32xf32>
    %c0_6 = arith.constant 0 : index
    %c0_7 = arith.constant 0 : index
    %7 = vector.load %arg3[%c0_6, %c0_7] : memref<16x16xf32, #tpu.memory_space<vmem>>, vector<16x16xf32>
    %c0_8 = arith.constant 0 : index
    %c0_9 = arith.constant 0 : index
    %8 = vector.load %arg5[%c0_8, %c0_9] : memref<24x128xf32, #tpu.memory_space<vmem>>, vector<1x96xf32>
    %c1 = arith.constant 1 : index
    %c0_10 = arith.constant 0 : index
    %9 = vector.load %arg5[%c1, %c0_10] : memref<24x128xf32, #tpu.memory_space<vmem>>, vector<1x32xf32>
    %c2 = arith.constant 2 : index
    %c0_11 = arith.constant 0 : index
    %10 = vector.load %arg5[%c2, %c0_11] : memref<24x128xf32, #tpu.memory_space<vmem>>, vector<1x32xf32>
    %c3 = arith.constant 3 : index
    %c0_12 = arith.constant 0 : index
    %11 = vector.load %arg5[%c3, %c0_12] : memref<24x128xf32, #tpu.memory_space<vmem>>, vector<1x32xf32>
    %c4 = arith.constant 4 : index
    %c0_13 = arith.constant 0 : index
    %12 = vector.load %arg5[%c4, %c0_13] : memref<24x128xf32, #tpu.memory_space<vmem>>, vector<1x64xf32>
    %c5 = arith.constant 5 : index
    %c0_14 = arith.constant 0 : index
    %13 = vector.load %arg5[%c5, %c0_14] : memref<24x128xf32, #tpu.memory_space<vmem>>, vector<1x32xf32>
    %c6 = arith.constant 6 : index
    %c0_15 = arith.constant 0 : index
    %14 = vector.load %arg5[%c6, %c0_15] : memref<24x128xf32, #tpu.memory_space<vmem>>, vector<1x32xf32>
    %c7 = arith.constant 7 : index
    %c0_16 = arith.constant 0 : index
    %15 = vector.load %arg5[%c7, %c0_16] : memref<24x128xf32, #tpu.memory_space<vmem>>, vector<1x32xf32>
    %16 = arith.truncf %6 : vector<16x32xf32> to vector<16x32xbf16>
    %c0_17 = arith.constant 0 : index
    %c0_18 = arith.constant 0 : index
    %c0_19 = arith.constant 0 : index
    %17 = vector.load %arg7[%c0_17, %c0_18, %c0_19] : memref<2x32x96xbf16, #tpu.memory_space<vmem>>, vector<1x32x96xbf16>
    %18 = vector.shape_cast %17 : vector<1x32x96xbf16> to vector<32x96xbf16>
    %cst_20 = arith.constant dense<0.000000e+00> : vector<16x96xf32>
    %19 = tpu.matmul %16, %18, %cst_20 {dimension_numbers = #tpu.dot_dimension_numbers<[1], [0], [0], [1], [0, 0, 1, 1], [], []>} : vector<16x32xbf16>, vector<32x96xbf16>, vector<16x96xf32> -> vector<16x96xf32>
    %20 = vector.broadcast %8 : vector<1x96xf32> to vector<16x96xf32>
    %21 = arith.addf %19, %20 : vector<16x96xf32>
    %22 = arith.truncf %21 : vector<16x96xf32> to vector<16x96xbf16>
    %23 = vector.extract_strided_slice %22 {offsets = [0, 0], sizes = [16, 8], strides = [1, 1]} : vector<16x96xbf16> to vector<16x8xbf16>
    %24 = vector.extract_strided_slice %22 {offsets = [0, 32], sizes = [16, 8], strides = [1, 1]} : vector<16x96xbf16> to vector<16x8xbf16>
    %25 = vector.extract_strided_slice %22 {offsets = [0, 64], sizes = [16, 8], strides = [1, 1]} : vector<16x96xbf16> to vector<16x8xbf16>
    %cst_21 = arith.constant dense<0.000000e+00> : vector<16x16xf32>
    %26 = tpu.matmul %23, %24, %cst_21 {dimension_numbers = #tpu.dot_dimension_numbers<[1], [1], [0], [0], [0, 0, 1, 0], [], []>} : vector<16x8xbf16>, vector<16x8xbf16>, vector<16x16xf32> -> vector<16x16xf32>
    %27 = arith.addf %26, %7 : vector<16x16xf32>
    %cst_22 = arith.constant dense<0xFF800000> : vector<16xf32>
    %28 = vector.multi_reduction <maximumf>, %27, %cst_22 [1] : vector<16x16xf32> to vector<16xf32>
    %29 = vector.shape_cast %28 : vector<16xf32> to vector<16x1xf32>
    %30 = vector.broadcast %29 : vector<16x1xf32> to vector<16x16xf32>
    %31 = arith.subf %27, %30 : vector<16x16xf32>
    %32 = math.exp %31 : vector<16x16xf32>
    %cst_23 = arith.constant dense<0.000000e+00> : vector<16xf32>
    %33 = vector.multi_reduction <add>, %32, %cst_23 [1] : vector<16x16xf32> to vector<16xf32>
    %34 = vector.shape_cast %33 : vector<16xf32> to vector<16x1xf32>
    %35 = tpu.reciprocal %34 {approx = true} : vector<16x1xf32> -> vector<16x1xf32>
    %36 = vector.broadcast %35 : vector<16x1xf32> to vector<16x16xf32>
    %37 = arith.mulf %32, %36 : vector<16x16xf32>
    %38 = arith.truncf %37 : vector<16x16xf32> to vector<16x16xbf16>
    %cst_24 = arith.constant dense<0.000000e+00> : vector<16x8xf32>
    %39 = tpu.matmul %38, %25, %cst_24 {dimension_numbers = #tpu.dot_dimension_numbers<[1], [0], [0], [1], [0, 0, 1, 1], [], []>} : vector<16x16xbf16>, vector<16x8xbf16>, vector<16x8xf32> -> vector<16x8xf32>
    %40 = arith.truncf %39 : vector<16x8xf32> to vector<16x8xbf16>
    %c0_25 = arith.constant 0 : index
    %c0_26 = arith.constant 0 : index
    %c0_27 = arith.constant 0 : index
    %c0_28 = arith.constant 0 : index
    %41 = vector.load %arg8[%c0_25, %c0_26, %c0_27, %c0_28] : memref<2x4x8x32xbf16, #tpu.memory_space<vmem>>, vector<1x1x8x32xbf16>
    %42 = vector.shape_cast %41 : vector<1x1x8x32xbf16> to vector<8x32xbf16>
    %cst_29 = arith.constant dense<0.000000e+00> : vector<16x32xf32>
    %43 = tpu.matmul %40, %42, %cst_29 {dimension_numbers = #tpu.dot_dimension_numbers<[1], [0], [0], [1], [0, 0, 1, 1], [], []>} : vector<16x8xbf16>, vector<8x32xbf16>, vector<16x32xf32> -> vector<16x32xf32>
    %44 = vector.broadcast %9 : vector<1x32xf32> to vector<16x32xf32>
    %45 = arith.addf %44, %43 : vector<16x32xf32>
    %46 = vector.extract_strided_slice %22 {offsets = [0, 8], sizes = [16, 8], strides = [1, 1]} : vector<16x96xbf16> to vector<16x8xbf16>
    %47 = vector.extract_strided_slice %22 {offsets = [0, 40], sizes = [16, 8], strides = [1, 1]} : vector<16x96xbf16> to vector<16x8xbf16>
    %48 = vector.extract_strided_slice %22 {offsets = [0, 72], sizes = [16, 8], strides = [1, 1]} : vector<16x96xbf16> to vector<16x8xbf16>
    %cst_30 = arith.constant dense<0.000000e+00> : vector<16x16xf32>
    %49 = tpu.matmul %46, %47, %cst_30 {dimension_numbers = #tpu.dot_dimension_numbers<[1], [1], [0], [0], [0, 0, 1, 0], [], []>} : vector<16x8xbf16>, vector<16x8xbf16>, vector<16x16xf32> -> vector<16x16xf32>
    %50 = arith.addf %49, %7 : vector<16x16xf32>
    %cst_31 = arith.constant dense<0xFF800000> : vector<16xf32>
    %51 = vector.multi_reduction <maximumf>, %50, %cst_31 [1] : vector<16x16xf32> to vector<16xf32>
    %52 = vector.shape_cast %51 : vector<16xf32> to vector<16x1xf32>
    %53 = vector.broadcast %52 : vector<16x1xf32> to vector<16x16xf32>
    %54 = arith.subf %50, %53 : vector<16x16xf32>
    %55 = math.exp %54 : vector<16x16xf32>
    %cst_32 = arith.constant dense<0.000000e+00> : vector<16xf32>
    %56 = vector.multi_reduction <add>, %55, %cst_32 [1] : vector<16x16xf32> to vector<16xf32>
    %57 = vector.shape_cast %56 : vector<16xf32> to vector<16x1xf32>
    %58 = tpu.reciprocal %57 {approx = true} : vector<16x1xf32> -> vector<16x1xf32>
    %59 = vector.broadcast %58 : vector<16x1xf32> to vector<16x16xf32>
    %60 = arith.mulf %55, %59 : vector<16x16xf32>
    %61 = arith.truncf %60 : vector<16x16xf32> to vector<16x16xbf16>
    %cst_33 = arith.constant dense<0.000000e+00> : vector<16x8xf32>
    %62 = tpu.matmul %61, %48, %cst_33 {dimension_numbers = #tpu.dot_dimension_numbers<[1], [0], [0], [1], [0, 0, 1, 1], [], []>} : vector<16x16xbf16>, vector<16x8xbf16>, vector<16x8xf32> -> vector<16x8xf32>
    %63 = arith.truncf %62 : vector<16x8xf32> to vector<16x8xbf16>
    %c0_34 = arith.constant 0 : index
    %c1_35 = arith.constant 1 : index
    %c0_36 = arith.constant 0 : index
    %c0_37 = arith.constant 0 : index
    %64 = vector.load %arg8[%c0_34, %c1_35, %c0_36, %c0_37] : memref<2x4x8x32xbf16, #tpu.memory_space<vmem>>, vector<1x1x8x32xbf16>
    %65 = vector.shape_cast %64 : vector<1x1x8x32xbf16> to vector<8x32xbf16>
    %cst_38 = arith.constant dense<0.000000e+00> : vector<16x32xf32>
    %66 = tpu.matmul %63, %65, %cst_38 {dimension_numbers = #tpu.dot_dimension_numbers<[1], [0], [0], [1], [0, 0, 1, 1], [], []>} : vector<16x8xbf16>, vector<8x32xbf16>, vector<16x32xf32> -> vector<16x32xf32>
    %67 = arith.addf %45, %66 : vector<16x32xf32>
    %68 = vector.extract_strided_slice %22 {offsets = [0, 16], sizes = [16, 8], strides = [1, 1]} : vector<16x96xbf16> to vector<16x8xbf16>
    %69 = vector.extract_strided_slice %22 {offsets = [0, 48], sizes = [16, 8], strides = [1, 1]} : vector<16x96xbf16> to vector<16x8xbf16>
    %70 = vector.extract_strided_slice %22 {offsets = [0, 80], sizes = [16, 8], strides = [1, 1]} : vector<16x96xbf16> to vector<16x8xbf16>
    %cst_39 = arith.constant dense<0.000000e+00> : vector<16x16xf32>
    %71 = tpu.matmul %68, %69, %cst_39 {dimension_numbers = #tpu.dot_dimension_numbers<[1], [1], [0], [0], [0, 0, 1, 0], [], []>} : vector<16x8xbf16>, vector<16x8xbf16>, vector<16x16xf32> -> vector<16x16xf32>
    %72 = arith.addf %71, %7 : vector<16x16xf32>
    %cst_40 = arith.constant dense<0xFF800000> : vector<16xf32>
    %73 = vector.multi_reduction <maximumf>, %72, %cst_40 [1] : vector<16x16xf32> to vector<16xf32>
    %74 = vector.shape_cast %73 : vector<16xf32> to vector<16x1xf32>
    %75 = vector.broadcast %74 : vector<16x1xf32> to vector<16x16xf32>
    %76 = arith.subf %72, %75 : vector<16x16xf32>
    %77 = math.exp %76 : vector<16x16xf32>
    %cst_41 = arith.constant dense<0.000000e+00> : vector<16xf32>
    %78 = vector.multi_reduction <add>, %77, %cst_41 [1] : vector<16x16xf32> to vector<16xf32>
    %79 = vector.shape_cast %78 : vector<16xf32> to vector<16x1xf32>
    %80 = tpu.reciprocal %79 {approx = true} : vector<16x1xf32> -> vector<16x1xf32>
    %81 = vector.broadcast %80 : vector<16x1xf32> to vector<16x16xf32>
    %82 = arith.mulf %77, %81 : vector<16x16xf32>
    %83 = arith.truncf %82 : vector<16x16xf32> to vector<16x16xbf16>
    %cst_42 = arith.constant dense<0.000000e+00> : vector<16x8xf32>
    %84 = tpu.matmul %83, %70, %cst_42 {dimension_numbers = #tpu.dot_dimension_numbers<[1], [0], [0], [1], [0, 0, 1, 1], [], []>} : vector<16x16xbf16>, vector<16x8xbf16>, vector<16x8xf32> -> vector<16x8xf32>
    %85 = arith.truncf %84 : vector<16x8xf32> to vector<16x8xbf16>
    %c0_43 = arith.constant 0 : index
    %c2_44 = arith.constant 2 : index
    %c0_45 = arith.constant 0 : index
    %c0_46 = arith.constant 0 : index
    %86 = vector.load %arg8[%c0_43, %c2_44, %c0_45, %c0_46] : memref<2x4x8x32xbf16, #tpu.memory_space<vmem>>, vector<1x1x8x32xbf16>
    %87 = vector.shape_cast %86 : vector<1x1x8x32xbf16> to vector<8x32xbf16>
    %cst_47 = arith.constant dense<0.000000e+00> : vector<16x32xf32>
    %88 = tpu.matmul %85, %87, %cst_47 {dimension_numbers = #tpu.dot_dimension_numbers<[1], [0], [0], [1], [0, 0, 1, 1], [], []>} : vector<16x8xbf16>, vector<8x32xbf16>, vector<16x32xf32> -> vector<16x32xf32>
    %89 = arith.addf %67, %88 : vector<16x32xf32>
    %90 = vector.extract_strided_slice %22 {offsets = [0, 24], sizes = [16, 8], strides = [1, 1]} : vector<16x96xbf16> to vector<16x8xbf16>
    %91 = vector.extract_strided_slice %22 {offsets = [0, 56], sizes = [16, 8], strides = [1, 1]} : vector<16x96xbf16> to vector<16x8xbf16>
    %92 = vector.extract_strided_slice %22 {offsets = [0, 88], sizes = [16, 8], strides = [1, 1]} : vector<16x96xbf16> to vector<16x8xbf16>
    %cst_48 = arith.constant dense<0.000000e+00> : vector<16x16xf32>
    %93 = tpu.matmul %90, %91, %cst_48 {dimension_numbers = #tpu.dot_dimension_numbers<[1], [1], [0], [0], [0, 0, 1, 0], [], []>} : vector<16x8xbf16>, vector<16x8xbf16>, vector<16x16xf32> -> vector<16x16xf32>
    %94 = arith.addf %93, %7 : vector<16x16xf32>
    %cst_49 = arith.constant dense<0xFF800000> : vector<16xf32>
    %95 = vector.multi_reduction <maximumf>, %94, %cst_49 [1] : vector<16x16xf32> to vector<16xf32>
    %96 = vector.shape_cast %95 : vector<16xf32> to vector<16x1xf32>
    %97 = vector.broadcast %96 : vector<16x1xf32> to vector<16x16xf32>
    %98 = arith.subf %94, %97 : vector<16x16xf32>
    %99 = math.exp %98 : vector<16x16xf32>
    %cst_50 = arith.constant dense<0.000000e+00> : vector<16xf32>
    %100 = vector.multi_reduction <add>, %99, %cst_50 [1] : vector<16x16xf32> to vector<16xf32>
    %101 = vector.shape_cast %100 : vector<16xf32> to vector<16x1xf32>
    %102 = tpu.reciprocal %101 {approx = true} : vector<16x1xf32> -> vector<16x1xf32>
    %103 = vector.broadcast %102 : vector<16x1xf32> to vector<16x16xf32>
    %104 = arith.mulf %99, %103 : vector<16x16xf32>
    %105 = arith.truncf %104 : vector<16x16xf32> to vector<16x16xbf16>
    %cst_51 = arith.constant dense<0.000000e+00> : vector<16x8xf32>
    %106 = tpu.matmul %105, %92, %cst_51 {dimension_numbers = #tpu.dot_dimension_numbers<[1], [0], [0], [1], [0, 0, 1, 1], [], []>} : vector<16x16xbf16>, vector<16x8xbf16>, vector<16x8xf32> -> vector<16x8xf32>
    %107 = arith.truncf %106 : vector<16x8xf32> to vector<16x8xbf16>
    %c0_52 = arith.constant 0 : index
    %c3_53 = arith.constant 3 : index
    %c0_54 = arith.constant 0 : index
    %c0_55 = arith.constant 0 : index
    %108 = vector.load %arg8[%c0_52, %c3_53, %c0_54, %c0_55] : memref<2x4x8x32xbf16, #tpu.memory_space<vmem>>, vector<1x1x8x32xbf16>
    %109 = vector.shape_cast %108 : vector<1x1x8x32xbf16> to vector<8x32xbf16>
    %cst_56 = arith.constant dense<0.000000e+00> : vector<16x32xf32>
    %110 = tpu.matmul %107, %109, %cst_56 {dimension_numbers = #tpu.dot_dimension_numbers<[1], [0], [0], [1], [0, 0, 1, 1], [], []>} : vector<16x8xbf16>, vector<8x32xbf16>, vector<16x32xf32> -> vector<16x32xf32>
    %111 = arith.addf %89, %110 : vector<16x32xf32>
    %112 = arith.addf %6, %111 : vector<16x32xf32>
    %cst_57 = arith.constant dense<0.000000e+00> : vector<16xf32>
    %113 = vector.multi_reduction <add>, %112, %cst_57 [1] : vector<16x32xf32> to vector<16xf32>
    %114 = vector.shape_cast %113 : vector<16xf32> to vector<16x1xf32>
    %cst_58 = arith.constant 3.200000e+01 : f32
    %115 = vector.broadcast %cst_58 : f32 to vector<16x1xf32>
    %116 = arith.divf %114, %115 : vector<16x1xf32>
    %117 = vector.broadcast %116 : vector<16x1xf32> to vector<16x32xf32>
    %118 = arith.subf %112, %117 : vector<16x32xf32>
    %119 = arith.mulf %118, %118 : vector<16x32xf32>
    %cst_59 = arith.constant dense<0.000000e+00> : vector<16xf32>
    %120 = vector.multi_reduction <add>, %119, %cst_59 [1] : vector<16x32xf32> to vector<16xf32>
    %121 = vector.shape_cast %120 : vector<16xf32> to vector<16x1xf32>
    %cst_60 = arith.constant 3.200000e+01 : f32
    %122 = vector.broadcast %cst_60 : f32 to vector<16x1xf32>
    %123 = arith.divf %121, %122 : vector<16x1xf32>
    %124 = vector.broadcast %116 : vector<16x1xf32> to vector<16x32xf32>
    %125 = arith.subf %112, %124 : vector<16x32xf32>
    %cst_61 = arith.constant 9.99999974E-6 : f32
    %126 = vector.broadcast %cst_61 : f32 to vector<16x1xf32>
    %127 = arith.addf %123, %126 : vector<16x1xf32>
    %128 = math.rsqrt %127 : vector<16x1xf32>
    %129 = vector.broadcast %128 : vector<16x1xf32> to vector<16x32xf32>
    %130 = arith.mulf %125, %129 : vector<16x32xf32>
    %131 = vector.broadcast %10 : vector<1x32xf32> to vector<16x32xf32>
    %132 = arith.mulf %130, %131 : vector<16x32xf32>
    %133 = vector.broadcast %11 : vector<1x32xf32> to vector<16x32xf32>
    %134 = arith.addf %132, %133 : vector<16x32xf32>
    %135 = arith.truncf %134 : vector<16x32xf32> to vector<16x32xbf16>
    %c0_62 = arith.constant 0 : index
    %c0_63 = arith.constant 0 : index
    %c0_64 = arith.constant 0 : index
    %136 = vector.load %arg9[%c0_62, %c0_63, %c0_64] : memref<2x32x64xbf16, #tpu.memory_space<vmem>>, vector<1x32x64xbf16>
    %137 = vector.shape_cast %136 : vector<1x32x64xbf16> to vector<32x64xbf16>
    %cst_65 = arith.constant dense<0.000000e+00> : vector<16x64xf32>
    %138 = tpu.matmul %135, %137, %cst_65 {dimension_numbers = #tpu.dot_dimension_numbers<[1], [0], [0], [1], [0, 0, 1, 1], [], []>} : vector<16x32xbf16>, vector<32x64xbf16>, vector<16x64xf32> -> vector<16x64xf32>
    %139 = vector.broadcast %12 : vector<1x64xf32> to vector<16x64xf32>
    %140 = arith.addf %138, %139 : vector<16x64xf32>
    %cst_66 = arith.constant 0.000000e+00 : f32
    %141 = vector.broadcast %cst_66 : f32 to vector<16x64xf32>
    %142 = arith.maximumf %140, %141 : vector<16x64xf32>
    %143 = arith.truncf %142 : vector<16x64xf32> to vector<16x64xbf16>
    %c0_67 = arith.constant 0 : index
    %c0_68 = arith.constant 0 : index
    %c0_69 = arith.constant 0 : index
    %144 = vector.load %arg10[%c0_67, %c0_68, %c0_69] : memref<2x64x32xbf16, #tpu.memory_space<vmem>>, vector<1x64x32xbf16>
    %145 = vector.shape_cast %144 : vector<1x64x32xbf16> to vector<64x32xbf16>
    %cst_70 = arith.constant dense<0.000000e+00> : vector<16x32xf32>
    %146 = tpu.matmul %143, %145, %cst_70 {dimension_numbers = #tpu.dot_dimension_numbers<[1], [0], [0], [1], [0, 0, 1, 1], [], []>} : vector<16x64xbf16>, vector<64x32xbf16>, vector<16x32xf32> -> vector<16x32xf32>
    %147 = vector.broadcast %13 : vector<1x32xf32> to vector<16x32xf32>
    %148 = arith.addf %146, %147 : vector<16x32xf32>
    %149 = arith.addf %134, %148 : vector<16x32xf32>
    %cst_71 = arith.constant dense<0.000000e+00> : vector<16xf32>
    %150 = vector.multi_reduction <add>, %149, %cst_71 [1] : vector<16x32xf32> to vector<16xf32>
    %151 = vector.shape_cast %150 : vector<16xf32> to vector<16x1xf32>
    %cst_72 = arith.constant 3.200000e+01 : f32
    %152 = vector.broadcast %cst_72 : f32 to vector<16x1xf32>
    %153 = arith.divf %151, %152 : vector<16x1xf32>
    %154 = vector.broadcast %153 : vector<16x1xf32> to vector<16x32xf32>
    %155 = arith.subf %149, %154 : vector<16x32xf32>
    %156 = arith.mulf %155, %155 : vector<16x32xf32>
    %cst_73 = arith.constant dense<0.000000e+00> : vector<16xf32>
    %157 = vector.multi_reduction <add>, %156, %cst_73 [1] : vector<16x32xf32> to vector<16xf32>
    %158 = vector.shape_cast %157 : vector<16xf32> to vector<16x1xf32>
    %cst_74 = arith.constant 3.200000e+01 : f32
    %159 = vector.broadcast %cst_74 : f32 to vector<16x1xf32>
    %160 = arith.divf %158, %159 : vector<16x1xf32>
    %161 = vector.broadcast %153 : vector<16x1xf32> to vector<16x32xf32>
    %162 = arith.subf %149, %161 : vector<16x32xf32>
    %cst_75 = arith.constant 9.99999974E-6 : f32
    %163 = vector.broadcast %cst_75 : f32 to vector<16x1xf32>
    %164 = arith.addf %160, %163 : vector<16x1xf32>
    %165 = math.rsqrt %164 : vector<16x1xf32>
    %166 = vector.broadcast %165 : vector<16x1xf32> to vector<16x32xf32>
    %167 = arith.mulf %162, %166 : vector<16x32xf32>
    %168 = vector.broadcast %14 : vector<1x32xf32> to vector<16x32xf32>
    %169 = arith.mulf %167, %168 : vector<16x32xf32>
    %170 = vector.broadcast %15 : vector<1x32xf32> to vector<16x32xf32>
    %171 = arith.addf %169, %170 : vector<16x32xf32>
    %c8 = arith.constant 8 : index
    %c0_76 = arith.constant 0 : index
    %172 = vector.load %arg5[%c8, %c0_76] : memref<24x128xf32, #tpu.memory_space<vmem>>, vector<1x96xf32>
    %c9 = arith.constant 9 : index
    %c0_77 = arith.constant 0 : index
    %173 = vector.load %arg5[%c9, %c0_77] : memref<24x128xf32, #tpu.memory_space<vmem>>, vector<1x32xf32>
    %c10 = arith.constant 10 : index
    %c0_78 = arith.constant 0 : index
    %174 = vector.load %arg5[%c10, %c0_78] : memref<24x128xf32, #tpu.memory_space<vmem>>, vector<1x32xf32>
    %c11 = arith.constant 11 : index
    %c0_79 = arith.constant 0 : index
    %175 = vector.load %arg5[%c11, %c0_79] : memref<24x128xf32, #tpu.memory_space<vmem>>, vector<1x32xf32>
    %c12 = arith.constant 12 : index
    %c0_80 = arith.constant 0 : index
    %176 = vector.load %arg5[%c12, %c0_80] : memref<24x128xf32, #tpu.memory_space<vmem>>, vector<1x64xf32>
    %c13 = arith.constant 13 : index
    %c0_81 = arith.constant 0 : index
    %177 = vector.load %arg5[%c13, %c0_81] : memref<24x128xf32, #tpu.memory_space<vmem>>, vector<1x32xf32>
    %c14 = arith.constant 14 : index
    %c0_82 = arith.constant 0 : index
    %178 = vector.load %arg5[%c14, %c0_82] : memref<24x128xf32, #tpu.memory_space<vmem>>, vector<1x32xf32>
    %c15 = arith.constant 15 : index
    %c0_83 = arith.constant 0 : index
    %179 = vector.load %arg5[%c15, %c0_83] : memref<24x128xf32, #tpu.memory_space<vmem>>, vector<1x32xf32>
    %180 = arith.truncf %171 : vector<16x32xf32> to vector<16x32xbf16>
    %c1_84 = arith.constant 1 : index
    %c0_85 = arith.constant 0 : index
    %c0_86 = arith.constant 0 : index
    %181 = vector.load %arg7[%c1_84, %c0_85, %c0_86] : memref<2x32x96xbf16, #tpu.memory_space<vmem>>, vector<1x32x96xbf16>
    %182 = vector.shape_cast %181 : vector<1x32x96xbf16> to vector<32x96xbf16>
    %cst_87 = arith.constant dense<0.000000e+00> : vector<16x96xf32>
    %183 = tpu.matmul %180, %182, %cst_87 {dimension_numbers = #tpu.dot_dimension_numbers<[1], [0], [0], [1], [0, 0, 1, 1], [], []>} : vector<16x32xbf16>, vector<32x96xbf16>, vector<16x96xf32> -> vector<16x96xf32>
    %184 = vector.broadcast %172 : vector<1x96xf32> to vector<16x96xf32>
    %185 = arith.addf %183, %184 : vector<16x96xf32>
    %186 = arith.truncf %185 : vector<16x96xf32> to vector<16x96xbf16>
    %187 = vector.extract_strided_slice %186 {offsets = [0, 0], sizes = [16, 8], strides = [1, 1]} : vector<16x96xbf16> to vector<16x8xbf16>
    %188 = vector.extract_strided_slice %186 {offsets = [0, 32], sizes = [16, 8], strides = [1, 1]} : vector<16x96xbf16> to vector<16x8xbf16>
    %189 = vector.extract_strided_slice %186 {offsets = [0, 64], sizes = [16, 8], strides = [1, 1]} : vector<16x96xbf16> to vector<16x8xbf16>
    %cst_88 = arith.constant dense<0.000000e+00> : vector<16x16xf32>
    %190 = tpu.matmul %187, %188, %cst_88 {dimension_numbers = #tpu.dot_dimension_numbers<[1], [1], [0], [0], [0, 0, 1, 0], [], []>} : vector<16x8xbf16>, vector<16x8xbf16>, vector<16x16xf32> -> vector<16x16xf32>
    %191 = arith.addf %190, %7 : vector<16x16xf32>
    %cst_89 = arith.constant dense<0xFF800000> : vector<16xf32>
    %192 = vector.multi_reduction <maximumf>, %191, %cst_89 [1] : vector<16x16xf32> to vector<16xf32>
    %193 = vector.shape_cast %192 : vector<16xf32> to vector<16x1xf32>
    %194 = vector.broadcast %193 : vector<16x1xf32> to vector<16x16xf32>
    %195 = arith.subf %191, %194 : vector<16x16xf32>
    %196 = math.exp %195 : vector<16x16xf32>
    %cst_90 = arith.constant dense<0.000000e+00> : vector<16xf32>
    %197 = vector.multi_reduction <add>, %196, %cst_90 [1] : vector<16x16xf32> to vector<16xf32>
    %198 = vector.shape_cast %197 : vector<16xf32> to vector<16x1xf32>
    %199 = tpu.reciprocal %198 {approx = true} : vector<16x1xf32> -> vector<16x1xf32>
    %200 = vector.broadcast %199 : vector<16x1xf32> to vector<16x16xf32>
    %201 = arith.mulf %196, %200 : vector<16x16xf32>
    %202 = arith.truncf %201 : vector<16x16xf32> to vector<16x16xbf16>
    %cst_91 = arith.constant dense<0.000000e+00> : vector<16x8xf32>
    %203 = tpu.matmul %202, %189, %cst_91 {dimension_numbers = #tpu.dot_dimension_numbers<[1], [0], [0], [1], [0, 0, 1, 1], [], []>} : vector<16x16xbf16>, vector<16x8xbf16>, vector<16x8xf32> -> vector<16x8xf32>
    %204 = arith.truncf %203 : vector<16x8xf32> to vector<16x8xbf16>
    %c1_92 = arith.constant 1 : index
    %c0_93 = arith.constant 0 : index
    %c0_94 = arith.constant 0 : index
    %c0_95 = arith.constant 0 : index
    %205 = vector.load %arg8[%c1_92, %c0_93, %c0_94, %c0_95] : memref<2x4x8x32xbf16, #tpu.memory_space<vmem>>, vector<1x1x8x32xbf16>
    %206 = vector.shape_cast %205 : vector<1x1x8x32xbf16> to vector<8x32xbf16>
    %cst_96 = arith.constant dense<0.000000e+00> : vector<16x32xf32>
    %207 = tpu.matmul %204, %206, %cst_96 {dimension_numbers = #tpu.dot_dimension_numbers<[1], [0], [0], [1], [0, 0, 1, 1], [], []>} : vector<16x8xbf16>, vector<8x32xbf16>, vector<16x32xf32> -> vector<16x32xf32>
    %208 = vector.broadcast %173 : vector<1x32xf32> to vector<16x32xf32>
    %209 = arith.addf %208, %207 : vector<16x32xf32>
    %210 = vector.extract_strided_slice %186 {offsets = [0, 8], sizes = [16, 8], strides = [1, 1]} : vector<16x96xbf16> to vector<16x8xbf16>
    %211 = vector.extract_strided_slice %186 {offsets = [0, 40], sizes = [16, 8], strides = [1, 1]} : vector<16x96xbf16> to vector<16x8xbf16>
    %212 = vector.extract_strided_slice %186 {offsets = [0, 72], sizes = [16, 8], strides = [1, 1]} : vector<16x96xbf16> to vector<16x8xbf16>
    %cst_97 = arith.constant dense<0.000000e+00> : vector<16x16xf32>
    %213 = tpu.matmul %210, %211, %cst_97 {dimension_numbers = #tpu.dot_dimension_numbers<[1], [1], [0], [0], [0, 0, 1, 0], [], []>} : vector<16x8xbf16>, vector<16x8xbf16>, vector<16x16xf32> -> vector<16x16xf32>
    %214 = arith.addf %213, %7 : vector<16x16xf32>
    %cst_98 = arith.constant dense<0xFF800000> : vector<16xf32>
    %215 = vector.multi_reduction <maximumf>, %214, %cst_98 [1] : vector<16x16xf32> to vector<16xf32>
    %216 = vector.shape_cast %215 : vector<16xf32> to vector<16x1xf32>
    %217 = vector.broadcast %216 : vector<16x1xf32> to vector<16x16xf32>
    %218 = arith.subf %214, %217 : vector<16x16xf32>
    %219 = math.exp %218 : vector<16x16xf32>
    %cst_99 = arith.constant dense<0.000000e+00> : vector<16xf32>
    %220 = vector.multi_reduction <add>, %219, %cst_99 [1] : vector<16x16xf32> to vector<16xf32>
    %221 = vector.shape_cast %220 : vector<16xf32> to vector<16x1xf32>
    %222 = tpu.reciprocal %221 {approx = true} : vector<16x1xf32> -> vector<16x1xf32>
    %223 = vector.broadcast %222 : vector<16x1xf32> to vector<16x16xf32>
    %224 = arith.mulf %219, %223 : vector<16x16xf32>
    %225 = arith.truncf %224 : vector<16x16xf32> to vector<16x16xbf16>
    %cst_100 = arith.constant dense<0.000000e+00> : vector<16x8xf32>
    %226 = tpu.matmul %225, %212, %cst_100 {dimension_numbers = #tpu.dot_dimension_numbers<[1], [0], [0], [1], [0, 0, 1, 1], [], []>} : vector<16x16xbf16>, vector<16x8xbf16>, vector<16x8xf32> -> vector<16x8xf32>
    %227 = arith.truncf %226 : vector<16x8xf32> to vector<16x8xbf16>
    %c1_101 = arith.constant 1 : index
    %c1_102 = arith.constant 1 : index
    %c0_103 = arith.constant 0 : index
    %c0_104 = arith.constant 0 : index
    %228 = vector.load %arg8[%c1_101, %c1_102, %c0_103, %c0_104] : memref<2x4x8x32xbf16, #tpu.memory_space<vmem>>, vector<1x1x8x32xbf16>
    %229 = vector.shape_cast %228 : vector<1x1x8x32xbf16> to vector<8x32xbf16>
    %cst_105 = arith.constant dense<0.000000e+00> : vector<16x32xf32>
    %230 = tpu.matmul %227, %229, %cst_105 {dimension_numbers = #tpu.dot_dimension_numbers<[1], [0], [0], [1], [0, 0, 1, 1], [], []>} : vector<16x8xbf16>, vector<8x32xbf16>, vector<16x32xf32> -> vector<16x32xf32>
    %231 = arith.addf %209, %230 : vector<16x32xf32>
    %232 = vector.extract_strided_slice %186 {offsets = [0, 16], sizes = [16, 8], strides = [1, 1]} : vector<16x96xbf16> to vector<16x8xbf16>
    %233 = vector.extract_strided_slice %186 {offsets = [0, 48], sizes = [16, 8], strides = [1, 1]} : vector<16x96xbf16> to vector<16x8xbf16>
    %234 = vector.extract_strided_slice %186 {offsets = [0, 80], sizes = [16, 8], strides = [1, 1]} : vector<16x96xbf16> to vector<16x8xbf16>
    %cst_106 = arith.constant dense<0.000000e+00> : vector<16x16xf32>
    %235 = tpu.matmul %232, %233, %cst_106 {dimension_numbers = #tpu.dot_dimension_numbers<[1], [1], [0], [0], [0, 0, 1, 0], [], []>} : vector<16x8xbf16>, vector<16x8xbf16>, vector<16x16xf32> -> vector<16x16xf32>
    %236 = arith.addf %235, %7 : vector<16x16xf32>
    %cst_107 = arith.constant dense<0xFF800000> : vector<16xf32>
    %237 = vector.multi_reduction <maximumf>, %236, %cst_107 [1] : vector<16x16xf32> to vector<16xf32>
    %238 = vector.shape_cast %237 : vector<16xf32> to vector<16x1xf32>
    %239 = vector.broadcast %238 : vector<16x1xf32> to vector<16x16xf32>
    %240 = arith.subf %236, %239 : vector<16x16xf32>
    %241 = math.exp %240 : vector<16x16xf32>
    %cst_108 = arith.constant dense<0.000000e+00> : vector<16xf32>
    %242 = vector.multi_reduction <add>, %241, %cst_108 [1] : vector<16x16xf32> to vector<16xf32>
    %243 = vector.shape_cast %242 : vector<16xf32> to vector<16x1xf32>
    %244 = tpu.reciprocal %243 {approx = true} : vector<16x1xf32> -> vector<16x1xf32>
    %245 = vector.broadcast %244 : vector<16x1xf32> to vector<16x16xf32>
    %246 = arith.mulf %241, %245 : vector<16x16xf32>
    %247 = arith.truncf %246 : vector<16x16xf32> to vector<16x16xbf16>
    %cst_109 = arith.constant dense<0.000000e+00> : vector<16x8xf32>
    %248 = tpu.matmul %247, %234, %cst_109 {dimension_numbers = #tpu.dot_dimension_numbers<[1], [0], [0], [1], [0, 0, 1, 1], [], []>} : vector<16x16xbf16>, vector<16x8xbf16>, vector<16x8xf32> -> vector<16x8xf32>
    %249 = arith.truncf %248 : vector<16x8xf32> to vector<16x8xbf16>
    %c1_110 = arith.constant 1 : index
    %c2_111 = arith.constant 2 : index
    %c0_112 = arith.constant 0 : index
    %c0_113 = arith.constant 0 : index
    %250 = vector.load %arg8[%c1_110, %c2_111, %c0_112, %c0_113] : memref<2x4x8x32xbf16, #tpu.memory_space<vmem>>, vector<1x1x8x32xbf16>
    %251 = vector.shape_cast %250 : vector<1x1x8x32xbf16> to vector<8x32xbf16>
    %cst_114 = arith.constant dense<0.000000e+00> : vector<16x32xf32>
    %252 = tpu.matmul %249, %251, %cst_114 {dimension_numbers = #tpu.dot_dimension_numbers<[1], [0], [0], [1], [0, 0, 1, 1], [], []>} : vector<16x8xbf16>, vector<8x32xbf16>, vector<16x32xf32> -> vector<16x32xf32>
    %253 = arith.addf %231, %252 : vector<16x32xf32>
    %254 = vector.extract_strided_slice %186 {offsets = [0, 24], sizes = [16, 8], strides = [1, 1]} : vector<16x96xbf16> to vector<16x8xbf16>
    %255 = vector.extract_strided_slice %186 {offsets = [0, 56], sizes = [16, 8], strides = [1, 1]} : vector<16x96xbf16> to vector<16x8xbf16>
    %256 = vector.extract_strided_slice %186 {offsets = [0, 88], sizes = [16, 8], strides = [1, 1]} : vector<16x96xbf16> to vector<16x8xbf16>
    %cst_115 = arith.constant dense<0.000000e+00> : vector<16x16xf32>
    %257 = tpu.matmul %254, %255, %cst_115 {dimension_numbers = #tpu.dot_dimension_numbers<[1], [1], [0], [0], [0, 0, 1, 0], [], []>} : vector<16x8xbf16>, vector<16x8xbf16>, vector<16x16xf32> -> vector<16x16xf32>
    %258 = arith.addf %257, %7 : vector<16x16xf32>
    %cst_116 = arith.constant dense<0xFF800000> : vector<16xf32>
    %259 = vector.multi_reduction <maximumf>, %258, %cst_116 [1] : vector<16x16xf32> to vector<16xf32>
    %260 = vector.shape_cast %259 : vector<16xf32> to vector<16x1xf32>
    %261 = vector.broadcast %260 : vector<16x1xf32> to vector<16x16xf32>
    %262 = arith.subf %258, %261 : vector<16x16xf32>
    %263 = math.exp %262 : vector<16x16xf32>
    %cst_117 = arith.constant dense<0.000000e+00> : vector<16xf32>
    %264 = vector.multi_reduction <add>, %263, %cst_117 [1] : vector<16x16xf32> to vector<16xf32>
    %265 = vector.shape_cast %264 : vector<16xf32> to vector<16x1xf32>
    %266 = tpu.reciprocal %265 {approx = true} : vector<16x1xf32> -> vector<16x1xf32>
    %267 = vector.broadcast %266 : vector<16x1xf32> to vector<16x16xf32>
    %268 = arith.mulf %263, %267 : vector<16x16xf32>
    %269 = arith.truncf %268 : vector<16x16xf32> to vector<16x16xbf16>
    %cst_118 = arith.constant dense<0.000000e+00> : vector<16x8xf32>
    %270 = tpu.matmul %269, %256, %cst_118 {dimension_numbers = #tpu.dot_dimension_numbers<[1], [0], [0], [1], [0, 0, 1, 1], [], []>} : vector<16x16xbf16>, vector<16x8xbf16>, vector<16x8xf32> -> vector<16x8xf32>
    %271 = arith.truncf %270 : vector<16x8xf32> to vector<16x8xbf16>
    %c1_119 = arith.constant 1 : index
    %c3_120 = arith.constant 3 : index
    %c0_121 = arith.constant 0 : index
    %c0_122 = arith.constant 0 : index
    %272 = vector.load %arg8[%c1_119, %c3_120, %c0_121, %c0_122] : memref<2x4x8x32xbf16, #tpu.memory_space<vmem>>, vector<1x1x8x32xbf16>
    %273 = vector.shape_cast %272 : vector<1x1x8x32xbf16> to vector<8x32xbf16>
    %cst_123 = arith.constant dense<0.000000e+00> : vector<16x32xf32>
    %274 = tpu.matmul %271, %273, %cst_123 {dimension_numbers = #tpu.dot_dimension_numbers<[1], [0], [0], [1], [0, 0, 1, 1], [], []>} : vector<16x8xbf16>, vector<8x32xbf16>, vector<16x32xf32> -> vector<16x32xf32>
    %275 = arith.addf %253, %274 : vector<16x32xf32>
    %276 = arith.addf %171, %275 : vector<16x32xf32>
    %cst_124 = arith.constant dense<0.000000e+00> : vector<16xf32>
    %277 = vector.multi_reduction <add>, %276, %cst_124 [1] : vector<16x32xf32> to vector<16xf32>
    %278 = vector.shape_cast %277 : vector<16xf32> to vector<16x1xf32>
    %cst_125 = arith.constant 3.200000e+01 : f32
    %279 = vector.broadcast %cst_125 : f32 to vector<16x1xf32>
    %280 = arith.divf %278, %279 : vector<16x1xf32>
    %281 = vector.broadcast %280 : vector<16x1xf32> to vector<16x32xf32>
    %282 = arith.subf %276, %281 : vector<16x32xf32>
    %283 = arith.mulf %282, %282 : vector<16x32xf32>
    %cst_126 = arith.constant dense<0.000000e+00> : vector<16xf32>
    %284 = vector.multi_reduction <add>, %283, %cst_126 [1] : vector<16x32xf32> to vector<16xf32>
    %285 = vector.shape_cast %284 : vector<16xf32> to vector<16x1xf32>
    %cst_127 = arith.constant 3.200000e+01 : f32
    %286 = vector.broadcast %cst_127 : f32 to vector<16x1xf32>
    %287 = arith.divf %285, %286 : vector<16x1xf32>
    %288 = vector.broadcast %280 : vector<16x1xf32> to vector<16x32xf32>
    %289 = arith.subf %276, %288 : vector<16x32xf32>
    %cst_128 = arith.constant 9.99999974E-6 : f32
    %290 = vector.broadcast %cst_128 : f32 to vector<16x1xf32>
    %291 = arith.addf %287, %290 : vector<16x1xf32>
    %292 = math.rsqrt %291 : vector<16x1xf32>
    %293 = vector.broadcast %292 : vector<16x1xf32> to vector<16x32xf32>
    %294 = arith.mulf %289, %293 : vector<16x32xf32>
    %295 = vector.broadcast %174 : vector<1x32xf32> to vector<16x32xf32>
    %296 = arith.mulf %294, %295 : vector<16x32xf32>
    %297 = vector.broadcast %175 : vector<1x32xf32> to vector<16x32xf32>
    %298 = arith.addf %296, %297 : vector<16x32xf32>
    %299 = arith.truncf %298 : vector<16x32xf32> to vector<16x32xbf16>
    %c1_129 = arith.constant 1 : index
    %c0_130 = arith.constant 0 : index
    %c0_131 = arith.constant 0 : index
    %300 = vector.load %arg9[%c1_129, %c0_130, %c0_131] : memref<2x32x64xbf16, #tpu.memory_space<vmem>>, vector<1x32x64xbf16>
    %301 = vector.shape_cast %300 : vector<1x32x64xbf16> to vector<32x64xbf16>
    %cst_132 = arith.constant dense<0.000000e+00> : vector<16x64xf32>
    %302 = tpu.matmul %299, %301, %cst_132 {dimension_numbers = #tpu.dot_dimension_numbers<[1], [0], [0], [1], [0, 0, 1, 1], [], []>} : vector<16x32xbf16>, vector<32x64xbf16>, vector<16x64xf32> -> vector<16x64xf32>
    %303 = vector.broadcast %176 : vector<1x64xf32> to vector<16x64xf32>
    %304 = arith.addf %302, %303 : vector<16x64xf32>
    %cst_133 = arith.constant 0.000000e+00 : f32
    %305 = vector.broadcast %cst_133 : f32 to vector<16x64xf32>
    %306 = arith.maximumf %304, %305 : vector<16x64xf32>
    %307 = arith.truncf %306 : vector<16x64xf32> to vector<16x64xbf16>
    %c1_134 = arith.constant 1 : index
    %c0_135 = arith.constant 0 : index
    %c0_136 = arith.constant 0 : index
    %308 = vector.load %arg10[%c1_134, %c0_135, %c0_136] : memref<2x64x32xbf16, #tpu.memory_space<vmem>>, vector<1x64x32xbf16>
    %309 = vector.shape_cast %308 : vector<1x64x32xbf16> to vector<64x32xbf16>
    %cst_137 = arith.constant dense<0.000000e+00> : vector<16x32xf32>
    %310 = tpu.matmul %307, %309, %cst_137 {dimension_numbers = #tpu.dot_dimension_numbers<[1], [0], [0], [1], [0, 0, 1, 1], [], []>} : vector<16x64xbf16>, vector<64x32xbf16>, vector<16x32xf32> -> vector<16x32xf32>
    %311 = vector.broadcast %177 : vector<1x32xf32> to vector<16x32xf32>
    %312 = arith.addf %310, %311 : vector<16x32xf32>
    %313 = arith.addf %298, %312 : vector<16x32xf32>
    %cst_138 = arith.constant dense<0.000000e+00> : vector<16xf32>
    %314 = vector.multi_reduction <add>, %313, %cst_138 [1] : vector<16x32xf32> to vector<16xf32>
    %315 = vector.shape_cast %314 : vector<16xf32> to vector<16x1xf32>
    %cst_139 = arith.constant 3.200000e+01 : f32
    %316 = vector.broadcast %cst_139 : f32 to vector<16x1xf32>
    %317 = arith.divf %315, %316 : vector<16x1xf32>
    %318 = vector.broadcast %317 : vector<16x1xf32> to vector<16x32xf32>
    %319 = arith.subf %313, %318 : vector<16x32xf32>
    %320 = arith.mulf %319, %319 : vector<16x32xf32>
    %cst_140 = arith.constant dense<0.000000e+00> : vector<16xf32>
    %321 = vector.multi_reduction <add>, %320, %cst_140 [1] : vector<16x32xf32> to vector<16xf32>
    %322 = vector.shape_cast %321 : vector<16xf32> to vector<16x1xf32>
    %cst_141 = arith.constant 3.200000e+01 : f32
    %323 = vector.broadcast %cst_141 : f32 to vector<16x1xf32>
    %324 = arith.divf %322, %323 : vector<16x1xf32>
    %325 = vector.broadcast %317 : vector<16x1xf32> to vector<16x32xf32>
    %326 = arith.subf %313, %325 : vector<16x32xf32>
    %cst_142 = arith.constant 9.99999974E-6 : f32
    %327 = vector.broadcast %cst_142 : f32 to vector<16x1xf32>
    %328 = arith.addf %324, %327 : vector<16x1xf32>
    %329 = math.rsqrt %328 : vector<16x1xf32>
    %330 = vector.broadcast %329 : vector<16x1xf32> to vector<16x32xf32>
    %331 = arith.mulf %326, %330 : vector<16x32xf32>
    %332 = vector.broadcast %178 : vector<1x32xf32> to vector<16x32xf32>
    %333 = arith.mulf %331, %332 : vector<16x32xf32>
    %334 = vector.broadcast %179 : vector<1x32xf32> to vector<16x32xf32>
    %335 = arith.addf %333, %334 : vector<16x32xf32>
    %c0_143 = arith.constant 0 : index
    %c0_144 = arith.constant 0 : index
    %336 = vector.load %arg4[%c0_143, %c0_144] : memref<2x16xbf16, #tpu.memory_space<vmem>>, vector<2x16xbf16>
    %337 = arith.truncf %335 : vector<16x32xf32> to vector<16x32xbf16>
    %cst_145 = arith.constant dense<0.000000e+00> : vector<2x32xf32>
    %338 = tpu.matmul %336, %337, %cst_145 {dimension_numbers = #tpu.dot_dimension_numbers<[1], [0], [0], [1], [0, 0, 1, 1], [], []>} : vector<2x16xbf16>, vector<16x32xbf16>, vector<2x32xf32> -> vector<2x32xf32>
    %c16 = arith.constant 16 : index
    %c0_146 = arith.constant 0 : index
    %339 = vector.load %arg5[%c16, %c0_146] : memref<24x128xf32, #tpu.memory_space<vmem>>, vector<1x32xf32>
    %c17 = arith.constant 17 : index
    %c0_147 = arith.constant 0 : index
    %340 = vector.load %arg5[%c17, %c0_147] : memref<24x128xf32, #tpu.memory_space<vmem>>, vector<1x128xf32>
    %341 = arith.truncf %338 : vector<2x32xf32> to vector<2x32xbf16>
    %c0_148 = arith.constant 0 : index
    %c0_149 = arith.constant 0 : index
    %342 = vector.load %arg11[%c0_148, %c0_149] : memref<32x32xbf16, #tpu.memory_space<vmem>>, vector<32x32xbf16>
    %cst_150 = arith.constant dense<0.000000e+00> : vector<2x32xf32>
    %343 = tpu.matmul %341, %342, %cst_150 {dimension_numbers = #tpu.dot_dimension_numbers<[1], [0], [0], [1], [0, 0, 1, 1], [], []>} : vector<2x32xbf16>, vector<32x32xbf16>, vector<2x32xf32> -> vector<2x32xf32>
    %344 = vector.broadcast %339 : vector<1x32xf32> to vector<2x32xf32>
    %345 = arith.addf %343, %344 : vector<2x32xf32>
    %cst_151 = arith.constant 0.000000e+00 : f32
    %346 = vector.broadcast %cst_151 : f32 to vector<2x32xf32>
    %347 = arith.maximumf %345, %346 : vector<2x32xf32>
    %348 = arith.truncf %347 : vector<2x32xf32> to vector<2x32xbf16>
    %c0_152 = arith.constant 0 : index
    %c0_153 = arith.constant 0 : index
    %349 = vector.load %arg12[%c0_152, %c0_153] : memref<32x128xbf16, #tpu.memory_space<vmem>>, vector<32x128xbf16>
    %cst_154 = arith.constant dense<0.000000e+00> : vector<2x128xf32>
    %350 = tpu.matmul %348, %349, %cst_154 {dimension_numbers = #tpu.dot_dimension_numbers<[1], [0], [0], [1], [0, 0, 1, 1], [], []>} : vector<2x32xbf16>, vector<32x128xbf16>, vector<2x128xf32> -> vector<2x128xf32>
    %351 = vector.broadcast %340 : vector<1x128xf32> to vector<2x128xf32>
    %352 = arith.addf %350, %351 : vector<2x128xf32>
    %c0_155 = arith.constant 0 : index
    %c0_156 = arith.constant 0 : index
    %c0_157 = arith.constant 0 : index
    %353 = vector.load %arg13[%c0_155, %c0_156, %c0_157] : memref<1x2x128xf32, #tpu.memory_space<vmem>>, vector<1x2x128xf32>
    %354 = vector.shape_cast %353 : vector<1x2x128xf32> to vector<2x128xf32>
    %355 = vector.shape_cast %352 : vector<2x128xf32> to vector<1x2x128xf32>
    tpu.vector_store %arg13[%c0_155, %c0_156, %c0_157], %355 {strides = array<i32>} : memref<1x2x128xf32, #tpu.memory_space<vmem>>, vector<1x2x128xf32>,
    return
  }
  func.func @transform_0(%arg0: i32) -> (i32, i32, i32) {
    %c0_i32 = arith.constant 0 : i32
    %c0_i32_0 = arith.constant 0 : i32
    %c0_i32_1 = arith.constant 0 : i32
    return %arg0, %c0_i32, %c0_i32_0 : i32, i32, i32
  }
  func.func @transform_1(%arg0: i32) -> (i32, i32) {
    %c0_i32 = arith.constant 0 : i32
    %c0_i32_0 = arith.constant 0 : i32
    %c0_i32_1 = arith.constant 0 : i32
    return %c0_i32, %c0_i32_0 : i32, i32
  }
  func.func @transform_2(%arg0: i32) -> (i32, i32) {
    %c0_i32 = arith.constant 0 : i32
    %c0_i32_0 = arith.constant 0 : i32
    %c0_i32_1 = arith.constant 0 : i32
    return %c0_i32, %c0_i32_0 : i32, i32
  }
  func.func @transform_3(%arg0: i32) -> (i32, i32) {
    %c0_i32 = arith.constant 0 : i32
    %c0_i32_0 = arith.constant 0 : i32
    %c0_i32_1 = arith.constant 0 : i32
    return %c0_i32, %c0_i32_0 : i32, i32
  }
  func.func @transform_4(%arg0: i32) -> (i32, i32) {
    %c0_i32 = arith.constant 0 : i32
    %c0_i32_0 = arith.constant 0 : i32
    %c0_i32_1 = arith.constant 0 : i32
    return %c0_i32, %c0_i32_0 : i32, i32
  }
  func.func @transform_5(%arg0: i32) -> (i32, i32) {
    %c0_i32 = arith.constant 0 : i32
    %c0_i32_0 = arith.constant 0 : i32
    %c0_i32_1 = arith.constant 0 : i32
    return %c0_i32, %c0_i32_0 : i32, i32
  }
  func.func @transform_6(%arg0: i32) -> (i32, i32, i32) {
    %c0_i32 = arith.constant 0 : i32
    %c0_i32_0 = arith.constant 0 : i32
    %c0_i32_1 = arith.constant 0 : i32
    %c0_i32_2 = arith.constant 0 : i32
    return %c0_i32, %c0_i32_0, %c0_i32_1 : i32, i32, i32
  }
  func.func @transform_7(%arg0: i32) -> (i32, i32, i32, i32) {
    %c0_i32 = arith.constant 0 : i32
    %c0_i32_0 = arith.constant 0 : i32
    %c0_i32_1 = arith.constant 0 : i32
    %c0_i32_2 = arith.constant 0 : i32
    %c0_i32_3 = arith.constant 0 : i32
    return %c0_i32, %c0_i32_0, %c0_i32_1, %c0_i32_2 : i32, i32, i32, i32
  }
  func.func @transform_8(%arg0: i32) -> (i32, i32, i32) {
    %c0_i32 = arith.constant 0 : i32
    %c0_i32_0 = arith.constant 0 : i32
    %c0_i32_1 = arith.constant 0 : i32
    %c0_i32_2 = arith.constant 0 : i32
    return %c0_i32, %c0_i32_0, %c0_i32_1 : i32, i32, i32
  }
  func.func @transform_9(%arg0: i32) -> (i32, i32, i32) {
    %c0_i32 = arith.constant 0 : i32
    %c0_i32_0 = arith.constant 0 : i32
    %c0_i32_1 = arith.constant 0 : i32
    %c0_i32_2 = arith.constant 0 : i32
    return %c0_i32, %c0_i32_0, %c0_i32_1 : i32, i32, i32
  }
  func.func @transform_10(%arg0: i32) -> (i32, i32) {
    %c0_i32 = arith.constant 0 : i32
    %c0_i32_0 = arith.constant 0 : i32
    %c0_i32_1 = arith.constant 0 : i32
    return %c0_i32, %c0_i32_0 : i32, i32
  }
  func.func @transform_11(%arg0: i32) -> (i32, i32) {
    %c0_i32 = arith.constant 0 : i32
    %c0_i32_0 = arith.constant 0 : i32
    %c0_i32_1 = arith.constant 0 : i32
    return %c0_i32, %c0_i32_0 : i32, i32
  }
  func.func @transform_12(%arg0: i32) -> (i32, i32, i32) {
    %c0_i32 = arith.constant 0 : i32
    %c0_i32_0 = arith.constant 0 : i32
    %c0_i32_1 = arith.constant 0 : i32
    return %arg0, %c0_i32, %c0_i32_0 : i32, i32, i32
  }
}

</mosaic_0001>

<bundles_post_ra>
// kernel: forward.1
= control target key start
LH: loop header
LB: loop body
LE: loop exit
PB: predicated region body
PF: predicated region fallthrough
CT: control target
= control target key end

     0   :  { %17 = vsyncpa [#allocation3], 0  ;;  %s3514_s0 = inlined_call_operand.vmem [shape: f32[1,16,4], index: 0, kind: input, shape index: {}]   ;;  %s3515_s1 = inlined_call_operand.vmem [shape: f32[16,32], index: 1, kind: input, shape index: {}]   ;;  %s3516_s2 = inlined_call_operand.vmem [shape: f32[16,16], index: 2, kind: input, shape index: {}]   ;;  %s3517_s3 = inlined_call_operand.vmem [shape: bf16[2,16], index: 3, kind: input, shape index: {}]   ;;  %s3518_s4 = inlined_call_operand.vmem [shape: f32[24,128], index: 4, kind: input, shape index: {}]   ;;  %s3519_s5 = inlined_call_operand.hbm [shape: bf16[4,32], index: 5, kind: input, shape index: {}]   ;;  %s3520_s6 = inlined_call_operand.vmem [shape: bf16[2,32,96], index: 6, kind: input, shape index: {}]   ;;  %s3521_s7 = inlined_call_operand.vmem [shape: bf16[2,4,8,32], index: 7, kind: input, shape index: {}]   ;;  %s3522_s8 = inlined_call_operand.vmem [shape: bf16[2,32,64], index: 8, kind: input, shape index: {}]   ;;  %s3523_s9 = inlined_call_operand.vmem [shape: bf16[2,64,32], index: 9, kind: input, shape index: {}]   ;;  %s3524_s10 = inlined_call_operand.vmem [shape: bf16[32,32], index: 10, kind: input, shape index: {}]   ;;  %s3525_s11 = inlined_call_operand.hbm [shape: bf16[32,128], index: 11, kind: input, shape index: {}]   ;;  %s3526_s12 = inlined_call_operand.hbm [shape: f32[1,2,128], index: 12, kind: output, shape index: {}]  }
   0x1   :  { %18 = vsyncpa [#allocation6], 0 }
   0x2   :  { %19 = vsyncpa [#allocation4], 0  ;;  %s2915_s21 = smov [#allocation2]   ;;  %s2916_s23 = smov [#allocation5]  }
   0x3   :  { %s36_s22 = sshll.u32 %s2915_s21, 4  ;;  %s55_s24 = sshll.u32 %s2916_s23, 4  ;;  %s37_s22 = int_to_ptr.vmem [resolvable:$true] %s36_s22  ;;  %s2997_s24 = int_to_ptr.vmem [resolvable:$true] %s55_s24 }
   0x4   :  { %s2843_s27 = scalar_lea.hbm %s3519_s5, 32 }
   0x5   :  { %p2844_p0 = scmp.ne.s32.totalorder %s3519_s5, %s2843_s27  ;;  %p2847_p1 = scmp.lt.u32.totalorder %s2843_s27, %s3519_s5 }
   0x7   :  { %p2849_p2 = pnand %p2847_p1, %p2844_p0 }
   0x9   :  { %2852 = shalt.err (!%p2849_p2)
}
   0xa   :  { %s2853_s14 = scalar_lea.vmem %s37_s22, 32  ;;  %p2858_p4 = scmp.lt.s32.totalorder %s37_s22, %s37_s22 }
   0xb   :  { %p2854_p3 = scmp.ne.s32.totalorder %s37_s22, %s2853_s14  ;;  %p2859_p5 = scmp.lt.s32.totalorder %s2853_s14, %s2853_s14 }
   0xd   :  { %p2860_p6 = por %p2859_p5, %p2858_p4 }
   0xf   :  { %p2861_p7 = pnand %p2860_p6, %p2854_p3 }
  0x11   :  { %2864 = shalt.err (!%p2861_p7)
}
  0x12   :  { %39 = dma.hbm_to_vmem [thread:$0]  %s3519_s5, 32, %s37_s22, [#allocation3]  }
  0x13   :  { %s2865_s19 = scalar_lea.hbm %s3525_s11, 256 }
  0x14   :  { %p2866_p8 = scmp.ne.s32.totalorder %s3525_s11, %s2865_s19  ;;  %p2869_p9 = scmp.lt.u32.totalorder %s2865_s19, %s3525_s11 }
  0x16   :  { %p2871_p10 = pnand %p2869_p9, %p2866_p8 }
  0x18   :  { %2874 = shalt.err (!%p2871_p10)
}
  0x19   :  { %s2875_s26 = scalar_lea.vmem %s2997_s24, 256  ;;  %p2880_p12 = scmp.lt.s32.totalorder %s2997_s24, %s2997_s24 }
  0x1a   :  { %p2876_p11 = scmp.ne.s32.totalorder %s2997_s24, %s2875_s26  ;;  %p2881_p13 = scmp.lt.s32.totalorder %s2875_s26, %s2875_s26 }
  0x1c   :  { %p2882_p0 = por %p2881_p13, %p2880_p12 }
  0x1e   :  { %p2883_p1 = pnand %p2882_p0, %p2876_p11 }
  0x20   :  { %2886 = shalt.err (!%p2883_p1)
}
  0x21   :  { %s2917_s5 = smov 64   ;;  %s2918_s22 = smov 4  }
  0x22   :  { %61 = dma.hbm_to_vmem [thread:$0]  %s3525_s11, 256, %s2997_s24, [#allocation6], %s2917_s5, %s2917_s5, %s2918_s22  }
  0x23   :  { %2909 = dma.done.wait [#allocation3], 32  }
  0x24   :  { %2910 = vsyncadd [#allocation3], 4294967264 }
  0x25   :  { %2911 = dma.done.wait [#allocation6], 256  }
  0x26   :  { %2912 = vsyncadd [#allocation6], 4294967040  ;;  %v2919_v0 = vmov 0.0   ;;  %vm2920_vm0 = vmmov 0   ;;  %vm79_vm1 = vcmask 1041408   ;;  %v69_v2 = vld [vmem:[%s3514_s0] sm:$0xff] }
  0x27   :  { %2496 = vmatprep.subr.bf16.mxu0 %v2919_v0  ;;  %2498 = vmatprep.mubr.msk.bf16.mxu0 %vm2920_vm0, %v2919_v0  ;;  %v72_v1 = vld [vmem:[#allocation2] sm:$0x3]  ;;  %v70_v3 = vld [vmem:[%s3514_s0 + $0x8] sm:$0xff]  ;;  %vm75_vm2 = vcmask 31744   ;;  %vm155_vm3 = vcmask 261120   ;;  %vm204_vm4 = vcmask 64512  }
  0x28   :  { %2502 = vmatprep.subr.bf16.mxu1 %v2919_v0  ;;  %2506 = vmatprep.mubr.msk.bf16.mxu1 %vm2920_vm0, %v2919_v0  ;;  %v81_v4 = vsel %vm79_vm1, %v72_v1, 0  ;;  %v71_v5 = vpack.c.bf16 %v70_v3, %v69_v2  ;;  %v2741_v6 = vld [vmem:[%s3520_s6] sm:$0xff]   ;;  %v2742_v7 = vld [vmem:[%s3520_s6 + $0x8] sm:$0xff]   ;;  %vm252_vm5 = vcmask 130048   ;;  %s2922_s27 = smov 88   ;;  %s2923_s28 = smov 120  }
  0x29   :  { %2497 = vmatpush3.bf16.msra.mxu0 %v81_v4  ;;  %2503 = vmatpush3.bf16.msra.mxu1 %v2741_v6  ;;  %v73_v8 = vld [vmem:[%s3515_s1] sm:$0xff]  ;;  %v74_v10 = vld [vmem:[%s3515_s1 + $0x8] sm:$0xff]  ;;  %s2921_s1 = smov 96   ;;  %vm328_vm6 = vcmask 1043456   ;;  %s2924_s24 = smov 56   ;;  %vm1043_vm7 = vcmask 523264  }
  0x2a   :  { %2510 = vmatprep.subr.bf16.mxu0 %v2919_v0  ;;  %2504 = vmatprep.subr.bf16.mxu1 %v2919_v0  ;;  %v2322_v17 = vld [vmem:[%s3518_s4] ss:$0 sm:$0xff]  ;;  %v3089_v29 = vld [vmem:[%s3516_s2 + $0x8] sm:$0xff]  ;;  %s2925_s30 = smov 80   ;;  %s2926_s13 = smov 112  }
  0x2b   :  { %v3084_v27 = vld [vmem:[%s3516_s2] sm:$0xff]  ;;  %s2927_s16 = smov 48   ;;  %s2928_s0 = smov 72  }
  0x2c   :  { %2499 = vmatmul.mubr.msk.bf16.vlgmr.msra.gmra.mrb[0].mxu0 %vm75_vm2, %v71_v5  ;;  %v324_v58 = vld [vmem:[%s3521_s7] sm:$0xf]  ;;  %s2929_s17 = smov 104   ;;  %s2930_s23 = smov 40  }
  0x2d   :  { %2512 = vmatprep.mubr.msk.bf16.mxu0 %vm2920_vm0, %v2919_v0  ;;  %2505 = vmatpush3.bf16.msra.mxu1 %v2742_v7  ;;  %v330_v59 = vsel %vm328_vm6, %v324_v58, 0  ;;  %s2931_s11 = smov [#allocation7]  }
  0x2e   :  { %2516 = vmatprep.subr.bf16.mxu1 %v2919_v0  ;;  %s2311_s14 = sshll.u32 %s2931_s11, 4  ;;  %s2312_s14 = int_to_ptr.vmem [resolvable:$true] %s2311_s14 }
  0x2f   :  { %p2892_p3 = scmp.lt.s32.totalorder %s2312_s14, %s2312_s14 }
  0xff   :  { %v117_v9 = vpop.f32.mrb[0].mxu0 }
 0x100   :  { %v2500_v11 = vpop.f32.mrb[1].mxu0  ;;  %v3059_v13 = vadd.f32 %v117_v9, %v73_v8 }
 0x101   :  { %v120_v12 = vpop.f32.mrb[2].mxu0 }
 0x102   :  { %v3061_v14 = vadd.f32 %v120_v12, %v74_v10  ;;  %v2501_v15 = vpop.f32.mrb[3].mxu0 }
 0x104   :  { %v134_v16 = vpack.c.bf16 %v3061_v14, %v3059_v13 }
 0x106   :  { %2507 = vmatmul.mubr.msk.bf16.vlgmr.msra.gmra.mrb[0].mxu1 %vm155_vm3, %v134_v16 }
 0x107   :  { %2518 = vmatprep.mubr.msk.bf16.mxu1 %vm2920_vm0, %v2919_v0 }
 0x1d9   :  { %v193_v18 = vpop.f32.mrb[0].mxu1 }
 0x1da   :  { %v2508_v19 = vpop.f32.mrb[1].mxu1  ;;  %v194_v21 = vadd.f32 %v2322_v17, %v193_v18 }
 0x1db   :  { %v196_v20 = vpop.f32.mrb[2].mxu1 }
 0x1dc   :  { %v197_v22 = vadd.f32 %v2322_v17, %v196_v20  ;;  %v2509_v23 = vpop.f32.mrb[3].mxu1 }
 0x1de   :  { %v3071_v24 = vpack.c.bf16 %v197_v22, %v194_v21 }
 0x1e0   :  { %202 = vrot.lane.b32.xlu0 %v3071_v24, %s2921_s1 }
 0x252   :  { %v203_v25 = vpop.permute.xlu0 %202 }
 0x253   :  { %v209_v26 = vsel %vm204_vm4, %v203_v25, 0 }
 0x254   :  { %2511 = vmatpush3.bf16.xpose.msra.mxu0 %v209_v26 }
 0x255   :  { %2522 = vmatprep.subr.bf16.mxu0 %v2919_v0 }
 0x25b   :  { %2513 = vmatmul.mubr.msk.bf16.vlgmr.msra.gmra.mrb[4].mxu0 %vm204_vm4, %v3071_v24 }
 0x25c   :  { %2524 = vmatprep.mubr.msk.bf16.mxu0 %vm2920_vm0, %v2919_v0  ;;  %2523 = vmatpush3.bf16.msra.mxu0 %v330_v59 }
 0x25d   :  { %2534 = vmatprep.subr.bf16.mxu0 %v2919_v0 }
 0x32e   :  { %v245_v28 = vpop.f32.mrb[4].mxu0 }
 0x32f   :  { %v246_v30 = vadd.f32 %v245_v28, %v3084_v27  ;;  %v2514_v31 = vpop.f32.mrb[5].mxu0 }
 0x330   :  { %v248_v32 = vpop.f32.mrb[6].mxu0 }
 0x331   :  { %v249_v33 = vadd.f32 %v248_v32, %v3089_v29  ;;  %v2515_v34 = vpop.f32.mrb[7].mxu0  ;;  %v253_v35 = vsel %vm252_vm5, %v246_v30, -inf }
 0x332   :  { %254 = vmax.xlane.f32.xlu0 %v253_v35 }
 0x333   :  { %v256_v36 = vsel %vm252_vm5, %v249_v33, -inf }
 0x334   :  { %257 = vmax.xlane.f32.xlu1 %v256_v36 }
 0x345   :  { %276 = vrot.lane.b32.xlu1 %v3071_v24, %s2917_s5 }
 0x3bf   :  { %v255_v37 = vpop.xlane.xlu0 %254 }
 0x3c0   :  { %v259_v38 = vsub.f32 %v246_v30, %v255_v37 }
 0x3c1   :  { %v258_v39 = vpop.xlane.xlu1 %257 }
 0x3c2   :  { %v261_v40 = vmul.f32 1.442695, %v259_v38  ;;  %v260_v41 = vsub.f32 %v249_v33, %v258_v39 }
 0x3c4   :  { %2761 = vpow2.f32 %v261_v40  ;;  %v263_v42 = vmul.f32 1.442695, %v260_v41  ;;  %v2332_v40 = vld [vmem:[%s3521_s7 + $0x4] sm:$0xf] }
 0x3c5   :  { %v277_v43 = vpop.permute.xlu1 %276  ;;  %v507_v41 = vsel %vm328_vm6, %v2332_v40, 0 }
 0x3c6   :  { %2763 = vpow2.f32 %v263_v42  ;;  %2517 = vmatpush3.bf16.msra.mxu1 %v277_v43 }
 0x3c7   :  { %2528 = vmatprep.subr.bf16.mxu1 %v2919_v0 }
 0x3ce   :  { %v2762_v44 = vpop.eup %2761 }
 0x3cf   :  { %v265_v45 = vsel %vm252_vm5, %v2762_v44, 0.0 }
 0x3d0   :  { %v2764_v46 = vpop.eup %2763  ;;  %266 = vadd.xlane.f32.xlu1 %v265_v45 }
 0x3d1   :  { %v268_v47 = vsel %vm252_vm5, %v2764_v46, 0.0 }
 0x3d4   :  { %269 = vadd.xlane.f32.xlu1 %v268_v47 }
 0x3e5   :  { %381 = vrot.lane.b32.xlu1 %v3071_v24, %s2922_s27 }
 0x3e9   :  { %379 = vrot.lane.b32.xlu1 %v3071_v24, %s2923_s28 }
 0x45d   :  { %v267_v48 = vpop.xlane.xlu1 %266 }
 0x45e   :  { %2765 = vrcp.f32 %v267_v48 }
 0x461   :  { %v270_v49 = vpop.xlane.xlu1 %269 }
 0x462   :  { %2767 = vrcp.f32 %v270_v49 }
 0x465   :  { %v382_v54 = vpop.permute.xlu1 %381 }
 0x466   :  { %v387_v56 = vsel %vm204_vm4, %v382_v54, 0 }
 0x468   :  { %v2766_v50 = vpop.eup %2765 }
 0x469   :  { %v273_v52 = vmul.f32 %v2766_v50, %v2762_v44  ;;  %v380_v57 = vpop.permute.xlu1 %379 }
 0x46c   :  { %v2768_v51 = vpop.eup %2767 }
 0x46d   :  { %v274_v53 = vmul.f32 %v2768_v51, %v2764_v46 }
 0x46f   :  { %v275_v55 = vpack.c.bf16 %v274_v53, %v273_v52 }
 0x471   :  { %2519 = vmatmul.mubr.msk.bf16.vlgmr.msra.gmra.mrb[4].mxu1 %vm252_vm5, %v275_v55 }
 0x472   :  { %2529 = vmatpush3.bf16.xpose.msra.mxu1 %v387_v56  ;;  %2530 = vmatprep.mubr.msk.bf16.mxu1 %vm2920_vm0, %v2919_v0 }
 0x473   :  { %2540 = vmatprep.subr.bf16.mxu1 %v2919_v0 }
 0x479   :  { %2531 = vmatmul.mubr.msk.bf16.vlgmr.msra.gmra.mrb[8].mxu1 %vm204_vm4, %v380_v57 }
 0x47a   :  { %2542 = vmatprep.mubr.msk.bf16.mxu1 %vm2920_vm0, %v2919_v0  ;;  %2541 = vmatpush3.bf16.msra.mxu1 %v507_v41 }
 0x47b   :  { %2552 = vmatprep.subr.bf16.mxu1 %v2919_v0 }
 0x544   :  { %v316_v60 = vpop.f32.mrb[4].mxu1 }
 0x545   :  { %v2520_v61 = vpop.f32.mrb[5].mxu1 }
 0x546   :  { %v319_v62 = vpop.f32.mrb[6].mxu1 }
 0x547   :  { %v323_v63 = vpack.c.bf16 %v319_v62, %v316_v60  ;;  %v2521_v1 = vpop.f32.mrb[7].mxu1 }
 0x549   :  { %2525 = vmatmul.mubr.msk.bf16.vlgmr.msra.gmra.mrb[8].mxu0 %vm204_vm4, %v323_v63 }
 0x54a   :  { %2536 = vmatprep.mubr.msk.bf16.mxu0 %vm2920_vm0, %v2919_v0 }
 0x54c   :  { %v423_v2 = vpop.f32.mrb[8].mxu1 }
 0x54d   :  { %v424_v3 = vadd.f32 %v423_v2, %v3084_v27  ;;  %v2532_v4 = vpop.f32.mrb[9].mxu1 }
 0x54e   :  { %v426_v5 = vpop.f32.mrb[10].mxu1 }
 0x54f   :  { %v427_v6 = vadd.f32 %v426_v5, %v3089_v29  ;;  %v2533_v7 = vpop.f32.mrb[11].mxu1  ;;  %v430_v8 = vsel %vm252_vm5, %v424_v3, -inf }
 0x550   :  { %431 = vmax.xlane.f32.xlu0 %v430_v8 }
 0x551   :  { %v433_v9 = vsel %vm252_vm5, %v427_v6, -inf }
 0x552   :  { %434 = vmax.xlane.f32.xlu1 %v433_v9 }
 0x566   :  { %453 = vrot.lane.b32.xlu0 %v3071_v24, %s2924_s24 }
 0x5dd   :  { %v432_v10 = vpop.xlane.xlu0 %431 }
 0x5de   :  { %v436_v11 = vsub.f32 %v424_v3, %v432_v10  ;;  %v2329_v3 = vld [vmem:[%s3518_s4 + $0x1] ss:$0 sm:$0xff] }
 0x5df   :  { %v435_v12 = vpop.xlane.xlu1 %434 }
 0x5e0   :  { %v438_v15 = vmul.f32 1.442695, %v436_v11  ;;  %v437_v16 = vsub.f32 %v427_v6, %v435_v12 }
 0x5e1   :  { %v454_v17 = vpop.permute.xlu0 %453 }
 0x5e2   :  { %2769 = vpow2.f32 %v438_v15  ;;  %v440_v18 = vmul.f32 1.442695, %v437_v16  ;;  %2535 = vmatpush3.bf16.msra.mxu0 %v454_v17 }
 0x5e3   :  { %2546 = vmatprep.subr.bf16.mxu0 %v2919_v0 }
 0x5e4   :  { %2771 = vpow2.f32 %v440_v18 }
 0x5ec   :  { %v2770_v19 = vpop.eup %2769 }
 0x5ed   :  { %v442_v20 = vsel %vm252_vm5, %v2770_v19, 0.0 }
 0x5ee   :  { %v2772_v21 = vpop.eup %2771  ;;  %443 = vadd.xlane.f32.xlu0 %v442_v20 }
 0x5ef   :  { %v445_v22 = vsel %vm252_vm5, %v2772_v21, 0.0 }
 0x5f2   :  { %446 = vadd.xlane.f32.xlu0 %v445_v22 }
 0x608   :  { %554 = vrot.lane.b32.xlu0 %v3071_v24, %s2925_s30 }
 0x60c   :  { %552 = vrot.lane.b32.xlu0 %v3071_v24, %s2926_s13 }
 0x61c   :  { %v3133_v23 = vpop.f32.mrb[8].mxu0 }
 0x61d   :  { %v2526_v25 = vpop.f32.mrb[9].mxu0  ;;  %v377_v4 = vadd.f32 %v2329_v3, %v3133_v23 }
 0x61e   :  { %v3135_v26 = vpop.f32.mrb[10].mxu0  ;;  %v2336_v25 = vld [vmem:[%s3521_s7 + $0x8] sm:$0xf] }
 0x61f   :  { %v2527_v28 = vpop.f32.mrb[11].mxu0  ;;  %v378_v6 = vadd.f32 %v2329_v3, %v3135_v26  ;;  %v680_v26 = vsel %vm328_vm6, %v2336_v25, 0 }
 0x67b   :  { %v444_v30 = vpop.xlane.xlu0 %443 }
 0x67c   :  { %2773 = vrcp.f32 %v444_v30 }
 0x67f   :  { %v447_v31 = vpop.xlane.xlu0 %446 }
 0x680   :  { %2775 = vrcp.f32 %v447_v31 }
 0x683   :  { %v555_v36 = vpop.permute.xlu0 %554 }
 0x684   :  { %v560_v38 = vsel %vm204_vm4, %v555_v36, 0 }
 0x686   :  { %v2774_v32 = vpop.eup %2773 }
 0x687   :  { %v450_v34 = vmul.f32 %v2774_v32, %v2770_v19  ;;  %v553_v39 = vpop.permute.xlu0 %552 }
 0x68a   :  { %v2776_v33 = vpop.eup %2775 }
 0x68b   :  { %v451_v35 = vmul.f32 %v2776_v33, %v2772_v21 }
 0x68d   :  { %v452_v37 = vpack.c.bf16 %v451_v35, %v450_v34 }
 0x68f   :  { %2537 = vmatmul.mubr.msk.bf16.vlgmr.msra.gmra.mrb[12].mxu0 %vm252_vm5, %v452_v37 }
 0x690   :  { %2547 = vmatpush3.bf16.xpose.msra.mxu0 %v560_v38  ;;  %2548 = vmatprep.mubr.msk.bf16.mxu0 %vm2920_vm0, %v2919_v0 }
 0x691   :  { %2558 = vmatprep.subr.bf16.mxu0 %v2919_v0 }
 0x697   :  { %2549 = vmatmul.mubr.msk.bf16.vlgmr.msra.gmra.mrb[16].mxu0 %vm204_vm4, %v553_v39 }
 0x698   :  { %2560 = vmatprep.mubr.msk.bf16.mxu0 %vm2920_vm0, %v2919_v0  ;;  %2559 = vmatpush3.bf16.msra.mxu0 %v680_v26 }
 0x699   :  { %2570 = vmatprep.subr.bf16.mxu0 %v2919_v0 }
 0x762   :  { %v493_v42 = vpop.f32.mrb[12].mxu0 }
 0x763   :  { %v2538_v43 = vpop.f32.mrb[13].mxu0 }
 0x764   :  { %v496_v44 = vpop.f32.mrb[14].mxu0 }
 0x765   :  { %v500_v45 = vpack.c.bf16 %v496_v44, %v493_v42  ;;  %v2539_v46 = vpop.f32.mrb[15].mxu0 }
 0x767   :  { %2543 = vmatmul.mubr.msk.bf16.vlgmr.msra.gmra.mrb[12].mxu1 %vm204_vm4, %v500_v45 }
 0x768   :  { %2554 = vmatprep.mubr.msk.bf16.mxu1 %vm2920_vm0, %v2919_v0 }
 0x76a   :  { %v596_v47 = vpop.f32.mrb[16].mxu0 }
 0x76b   :  { %v597_v48 = vadd.f32 %v596_v47, %v3084_v27  ;;  %v2550_v49 = vpop.f32.mrb[17].mxu0 }
 0x76c   :  { %v599_v50 = vpop.f32.mrb[18].mxu0 }
 0x76d   :  { %v600_v51 = vadd.f32 %v599_v50, %v3089_v29  ;;  %v2551_v52 = vpop.f32.mrb[19].mxu0  ;;  %v603_v53 = vsel %vm252_vm5, %v597_v48, -inf }
 0x76e   :  { %604 = vmax.xlane.f32.xlu1 %v603_v53 }
 0x76f   :  { %v606_v54 = vsel %vm252_vm5, %v600_v51, -inf }
 0x770   :  { %607 = vmax.xlane.f32.xlu0 %v606_v54 }
 0x77f   :  { %626 = vrot.lane.b32.xlu1 %v3071_v24, %s2927_s16 }
 0x7fb   :  { %v605_v55 = vpop.xlane.xlu1 %604 }
 0x7fc   :  { %v609_v56 = vsub.f32 %v597_v48, %v605_v55 }
 0x7fd   :  { %v608_v57 = vpop.xlane.xlu0 %607 }
 0x7fe   :  { %v611_v58 = vmul.f32 1.442695, %v609_v56  ;;  %v610_v59 = vsub.f32 %v600_v51, %v608_v57 }
 0x7ff   :  { %v627_v60 = vpop.permute.xlu1 %626 }
 0x800   :  { %2777 = vpow2.f32 %v611_v58  ;;  %v613_v61 = vmul.f32 1.442695, %v610_v59  ;;  %2553 = vmatpush3.bf16.msra.mxu1 %v627_v60 }
 0x801   :  { %2564 = vmatprep.subr.bf16.mxu1 %v2919_v0 }
 0x802   :  { %2779 = vpow2.f32 %v613_v61 }
 0x80a   :  { %v2778_v62 = vpop.eup %2777 }
 0x80b   :  { %v615_v63 = vsel %vm252_vm5, %v2778_v62, 0.0 }
 0x80c   :  { %v2780_v1 = vpop.eup %2779  ;;  %616 = vadd.xlane.f32.xlu1 %v615_v63 }
 0x80d   :  { %v618_v2 = vsel %vm252_vm5, %v2780_v1, 0.0 }
 0x810   :  { %619 = vadd.xlane.f32.xlu1 %v618_v2 }
 0x821   :  { %727 = vrot.lane.b32.xlu1 %v3071_v24, %s2928_s0 }
 0x825   :  { %725 = vrot.lane.b32.xlu1 %v3071_v24, %s2929_s17 }
 0x83a   :  { %v543_v5 = vpop.f32.mrb[12].mxu1 }
 0x83b   :  { %v550_v7 = vadd.f32 %v543_v5, %v377_v4  ;;  %v2544_v8 = vpop.f32.mrb[13].mxu1 }
 0x83c   :  { %v546_v9 = vpop.f32.mrb[14].mxu1 }
 0x83d   :  { %v551_v10 = vadd.f32 %v546_v9, %v378_v6  ;;  %v2545_v11 = vpop.f32.mrb[15].mxu1 }
 0x899   :  { %v617_v12 = vpop.xlane.xlu1 %616 }
 0x89a   :  { %2781 = vrcp.f32 %v617_v12 }
 0x89d   :  { %v620_v15 = vpop.xlane.xlu1 %619 }
 0x89e   :  { %2783 = vrcp.f32 %v620_v15 }
 0x8a1   :  { %v728_v20 = vpop.permute.xlu1 %727 }
 0x8a2   :  { %v733_v22 = vsel %vm204_vm4, %v728_v20, 0 }
 0x8a4   :  { %v2782_v16 = vpop.eup %2781 }
 0x8a5   :  { %v623_v18 = vmul.f32 %v2782_v16, %v2778_v62  ;;  %v726_v23 = vpop.permute.xlu1 %725 }
 0x8a8   :  { %v2784_v17 = vpop.eup %2783 }
 0x8a9   :  { %v624_v19 = vmul.f32 %v2784_v17, %v2780_v1 }
 0x8ab   :  { %v625_v21 = vpack.c.bf16 %v624_v19, %v623_v18 }
 0x8ad   :  { %2555 = vmatmul.mubr.msk.bf16.vlgmr.msra.gmra.mrb[16].mxu1 %vm252_vm5, %v625_v21 }
 0x8ae   :  { %2565 = vmatpush3.bf16.xpose.msra.mxu1 %v733_v22  ;;  %2566 = vmatprep.mubr.msk.bf16.mxu1 %vm2920_vm0, %v2919_v0 }
 0x8af   :  { %2576 = vmatprep.subr.bf16.mxu1 %v2919_v0 }
 0x8b5   :  { %2567 = vmatmul.mubr.msk.bf16.vlgmr.msra.gmra.mrb[20].mxu1 %vm204_vm4, %v726_v23 }
 0x8b6   :  { %2578 = vmatprep.mubr.msk.bf16.mxu1 %vm2920_vm0, %v2919_v0 }
 0x980   :  { %v666_v28 = vpop.f32.mrb[16].mxu1 }
 0x981   :  { %v2556_v30 = vpop.f32.mrb[17].mxu1 }
 0x982   :  { %v669_v31 = vpop.f32.mrb[18].mxu1 }
 0x983   :  { %v673_v32 = vpack.c.bf16 %v669_v31, %v666_v28  ;;  %v2557_v33 = vpop.f32.mrb[19].mxu1 }
 0x984   :  { %v2744_v33 = vld [vmem:[%s3522_s8 + $0x8] sm:$0xff]  }
 0x985   :  { %2561 = vmatmul.mubr.msk.bf16.vlgmr.msra.gmra.mrb[20].mxu0 %vm204_vm4, %v673_v32 }
 0x986   :  { %2572 = vmatprep.mubr.msk.bf16.mxu0 %vm2920_vm0, %v2919_v0 }
 0x988   :  { %v769_v34 = vpop.f32.mrb[20].mxu1 }
 0x989   :  { %v770_v35 = vadd.f32 %v769_v34, %v3084_v27  ;;  %v2568_v36 = vpop.f32.mrb[21].mxu1  ;;  %v2745_v34 = vld [vmem:[%s3523_s9] sm:$0xff]  }
 0x98a   :  { %v772_v37 = vpop.f32.mrb[22].mxu1 }
 0x98b   :  { %v773_v38 = vadd.f32 %v772_v37, %v3089_v29  ;;  %v2569_v39 = vpop.f32.mrb[23].mxu1  ;;  %v776_v40 = vsel %vm252_vm5, %v770_v35, -inf }
 0x98c   :  { %777 = vmax.xlane.f32.xlu0 %v776_v40 }
 0x98d   :  { %v779_v41 = vsel %vm252_vm5, %v773_v38, -inf }
 0x98e   :  { %780 = vmax.xlane.f32.xlu1 %v779_v41 }
 0xa19   :  { %v778_v42 = vpop.xlane.xlu0 %777 }
 0xa1a   :  { %v782_v43 = vsub.f32 %v770_v35, %v778_v42  ;;  %v2746_v35 = vld [vmem:[%s3523_s9 + $0x8] sm:$0xff]  }
 0xa1b   :  { %v781_v44 = vpop.xlane.xlu1 %780 }
 0xa1c   :  { %v784_v45 = vmul.f32 1.442695, %v782_v43  ;;  %v783_v46 = vsub.f32 %v773_v38, %v781_v44  ;;  %v2342_v44 = vld [vmem:[%s3518_s4 + $0x2] ss:$0 sm:$0xff] }
 0xa1e   :  { %2785 = vpow2.f32 %v784_v45  ;;  %v786_v47 = vmul.f32 1.442695, %v783_v46 }
 0xa20   :  { %2787 = vpow2.f32 %v786_v47 }
 0xa28   :  { %v2786_v48 = vpop.eup %2785 }
 0xa29   :  { %v788_v49 = vsel %vm252_vm5, %v2786_v48, 0.0 }
 0xa2a   :  { %v2788_v50 = vpop.eup %2787  ;;  %789 = vadd.xlane.f32.xlu0 %v788_v49 }
 0xa2b   :  { %v791_v51 = vsel %vm252_vm5, %v2788_v50, 0.0 }
 0xa2e   :  { %792 = vadd.xlane.f32.xlu0 %v791_v51 }
 0xa44   :  { %799 = vrot.lane.b32.xlu0 %v3071_v24, %s2930_s23  ;;  %v2340_v24 = vld [vmem:[%s3521_s7 + $0xc] sm:$0xf] }
 0xa45   :  { %v853_v3 = vsel %vm328_vm6, %v2340_v24, 0 }
 0xa46   :  { %2577 = vmatpush3.bf16.msra.mxu1 %v853_v3 }
 0xa47   :  { %2590 = vmatprep.subr.bf16.mxu1 %v2919_v0 }
 0xa58   :  { %v716_v52 = vpop.f32.mrb[20].mxu0 }
 0xa59   :  { %v723_v53 = vadd.f32 %v716_v52, %v550_v7  ;;  %v2562_v54 = vpop.f32.mrb[21].mxu0 }
 0xa5a   :  { %v719_v55 = vpop.f32.mrb[22].mxu0  ;;  %v2748_v54 = vld [vmem:[%s3523_s9 + $0x18] sm:$0xff]  }
 0xa5b   :  { %v724_v56 = vadd.f32 %v719_v55, %v551_v10  ;;  %v2563_v57 = vpop.f32.mrb[23].mxu0  ;;  %v2344_v55 = vld [vmem:[%s3518_s4 + $0x4] ss:$0 sm:$0xff] }
 0xab7   :  { %v790_v58 = vpop.xlane.xlu0 %789 }
 0xab8   :  { %2789 = vrcp.f32 %v790_v58 }
 0xabb   :  { %v793_v59 = vpop.xlane.xlu0 %792 }
 0xabc   :  { %2791 = vrcp.f32 %v793_v59 }
 0xabf   :  { %v800_v60 = vpop.permute.xlu0 %799 }
 0xac0   :  { %2571 = vmatpush3.bf16.msra.mxu0 %v800_v60 }
 0xac1   :  { %2582 = vmatprep.subr.bf16.mxu0 %v2919_v0 }
 0xac2   :  { %v2790_v61 = vpop.eup %2789 }
 0xac3   :  { %v796_v63 = vmul.f32 %v2790_v61, %v2786_v48  ;;  %v2343_v48 = vld [vmem:[%s3518_s4 + $0x3] ss:$0 sm:$0xff] }
 0xac6   :  { %v2792_v62 = vpop.eup %2791 }
 0xac7   :  { %v797_v1 = vmul.f32 %v2792_v62, %v2788_v50 }
 0xac9   :  { %v798_v2 = vpack.c.bf16 %v797_v1, %v796_v63 }
 0xacb   :  { %2573 = vmatmul.mubr.msk.bf16.vlgmr.msra.gmra.mrb[24].mxu0 %vm252_vm5, %v798_v2  ;;  %v2348_v2 = vld [vmem:[%s3518_s4 + $0x5] ss:$0 sm:$0xff] }
 0xacc   :  { %2586 = vmatprep.mubr.msk.bf16.mxu0 %vm2920_vm0, %v2919_v0 }
 0xb9e   :  { %v839_v4 = vpop.f32.mrb[24].mxu0 }
 0xb9f   :  { %v2574_v5 = vpop.f32.mrb[25].mxu0 }
 0xba0   :  { %v842_v6 = vpop.f32.mrb[26].mxu0 }
 0xba1   :  { %v846_v7 = vpack.c.bf16 %v842_v6, %v839_v4  ;;  %v2575_v8 = vpop.f32.mrb[27].mxu0 }
 0xba3   :  { %2579 = vmatmul.mubr.msk.bf16.vlgmr.msra.gmra.mrb[24].mxu1 %vm204_vm4, %v846_v7 }
 0xba4   :  { %2598 = vmatprep.mubr.msk.bf16.mxu1 %vm2920_vm0, %v2919_v0  ;;  %2591 = vmatpush3.bf16.msra.mxu1 %v2745_v34 }
 0xba5   :  { %2592 = vmatprep.subr.bf16.mxu1 %v2919_v0 }
 0xba8   :  { %2593 = vmatpush3.bf16.msra.mxu1 %v2746_v35  ;;  %v2354_v35 = vld [vmem:[%s3518_s4 + $0x6] ss:$0 sm:$0xff] }
 0xba9   :  { %2594 = vmatprep.subr.bf16.mxu1 %v2919_v0 }
 0xc76   :  { %v889_v9 = vpop.f32.mrb[24].mxu1 }
 0xc77   :  { %v896_v10 = vadd.f32 %v889_v9, %v723_v53  ;;  %v2580_v11 = vpop.f32.mrb[25].mxu1  ;;  %v2747_v53 = vld [vmem:[%s3523_s9 + $0x10] sm:$0xff]  }
 0xc78   :  { %v892_v12 = vpop.f32.mrb[26].mxu1  ;;  %2595 = vmatpush3.bf16.msra.mxu1 %v2747_v53 }
 0xc79   :  { %v897_v15 = vadd.f32 %v892_v12, %v724_v56  ;;  %v2581_v16 = vpop.f32.mrb[27].mxu1  ;;  %v898_v17 = vadd.f32 %v896_v10, %v3059_v13  ;;  %2596 = vmatprep.subr.bf16.mxu1 %v2919_v0 }
 0xc7b   :  { %v900_v18 = vsel %vm155_vm3, %v898_v17, 0.0  ;;  %v899_v19 = vadd.f32 %v897_v15, %v3061_v14  ;;  %v2743_v14 = vld [vmem:[%s3522_s8] sm:$0xff]  }
 0xc7c   :  { %901 = vadd.xlane.f32.xlu0 %v900_v18  ;;  %2583 = vmatpush3.bf16.msra.mxu0 %v2743_v14 }
 0xc7d   :  { %v903_v20 = vsel %vm155_vm3, %v899_v19, 0.0  ;;  %2584 = vmatprep.subr.bf16.mxu0 %v2919_v0  ;;  %2597 = vmatpush3.bf16.msra.mxu1 %v2748_v54 }
 0xc7e   :  { %904 = vadd.xlane.f32.xlu1 %v903_v20  ;;  %2616 = vmatprep.subr.bf16.mxu1 %v2919_v0 }
 0xc80   :  { %2585 = vmatpush3.bf16.msra.mxu0 %v2744_v33 }
 0xc81   :  { %2602 = vmatprep.subr.bf16.mxu0 %v2919_v0 }
 0xd09   :  { %v902_v21 = vpop.xlane.xlu0 %901 }
 0xd0a   :  { %v907_v22 = vmul.f32 0.03125, %v902_v21 }
 0xd0b   :  { %v905_v23 = vpop.xlane.xlu1 %904 }
 0xd0c   :  { %v909_v25 = vsub.f32 %v898_v17, %v907_v22  ;;  %v908_v26 = vmul.f32 0.03125, %v905_v23 }
 0xd0e   :  { %v910_v28 = vsub.f32 %v899_v19, %v908_v26  ;;  %v911_v30 = vmul.f32 %v909_v25, %v909_v25  ;;  %v2750_v26 = vld [vmem:[%s3520_s6 + $0x18] sm:$0xff]  }
 0xd10   :  { %v913_v31 = vsel %vm155_vm3, %v911_v30, 0.0  ;;  %v912_v32 = vmul.f32 %v910_v28, %v910_v28 }
 0xd11   :  { %914 = vadd.xlane.f32.xlu1 %v913_v31 }
 0xd12   :  { %v916_v13 = vsel %vm155_vm3, %v912_v32, 0.0 }
 0xd15   :  { %917 = vadd.xlane.f32.xlu1 %v916_v13 }
 0xd9e   :  { %v915_v36 = vpop.xlane.xlu1 %914 }
 0xd9f   :  { %v919_v37 = vmul.f32 0.03125, %v915_v36 }
 0xda1   :  { %v921_v38 = vadd.f32 1e-05, %v919_v37 }
 0xda2   :  { %v918_v39 = vpop.xlane.xlu1 %917 }
 0xda3   :  { %2793 = vrsqrt.f32 %v921_v38  ;;  %v920_v40 = vmul.f32 0.03125, %v918_v39  ;;  %v2355_v39 = vld [vmem:[%s3518_s4 + $0x7] ss:$0 sm:$0xff] }
 0xda5   :  { %v922_v41 = vadd.f32 1e-05, %v920_v40 }
 0xda7   :  { %2795 = vrsqrt.f32 %v922_v41 }
 0xdad   :  { %v2794_v42 = vpop.eup %2793 }
 0xdae   :  { %v925_v43 = vmul.f32 %v2794_v42, %v909_v25  ;;  %v2749_v25 = vld [vmem:[%s3520_s6 + $0x10] sm:$0xff]   ;;  %s2887_s6 = scalar_lea.vmem %s2312_s14, 32 }
 0xdaf   :  { %p2888_p2 = scmp.ne.s32.totalorder %s2312_s14, %s2887_s6  ;;  %p2893_p4 = scmp.lt.s32.totalorder %s2887_s6, %s2887_s6 }
 0xdb0   :  { %v931_v46 = vmul.f32 %v2342_v44, %v925_v43 }
 0xdb1   :  { %v2796_v45 = vpop.eup %2795  ;;  %p2894_p5 = por %p2893_p4, %p2892_p3 }
 0xdb2   :  { %v926_v47 = vmul.f32 %v2796_v45, %v910_v28  ;;  %v937_v50 = vadd.f32 %v2343_v48, %v931_v46 }
 0xdb3   :  { %p2895_p6 = pnand %p2894_p5, %p2888_p2 }
 0xdb4   :  { %v932_v49 = vmul.f32 %v2342_v44, %v926_v47  ;;  %v2360_v44 = vld [vmem:[%s3518_s4 + $0x8] ss:$0 sm:$0xff] }
 0xdb6   :  { %v938_v51 = vadd.f32 %v2343_v48, %v932_v49 }
 0xdb8   :  { %v939_v52 = vpack.c.bf16 %v938_v51, %v937_v50 }
 0xdba   :  { %2587 = vmatmul.mubr.msk.bf16.vlgmr.msra.gmra.mrb[28].mxu0 %vm155_vm3, %v939_v52 }
 0xdbb   :  { %2606 = vmatprep.mubr.msk.bf16.mxu0 %vm2920_vm0, %v2919_v0  ;;  %2603 = vmatpush3.bf16.msra.mxu0 %v2749_v25 }
 0xdbc   :  { %2604 = vmatprep.subr.bf16.mxu0 %v2919_v0 }
 0xdbf   :  { %2605 = vmatpush3.bf16.msra.mxu0 %v2750_v26 }
 0xdc0   :  { %2610 = vmatprep.subr.bf16.mxu0 %v2919_v0 }
 0xe8d   :  { %v997_v56 = vpop.f32.mrb[28].mxu0 }
 0xe8e   :  { %v998_v57 = vadd.f32 %v2344_v55, %v997_v56  ;;  %v2588_v58 = vpop.f32.mrb[29].mxu0 }
 0xe8f   :  { %v1000_v59 = vpop.f32.mrb[30].mxu0 }
 0xe90   :  { %v1001_v60 = vadd.f32 %v2344_v55, %v1000_v59  ;;  %v2589_v61 = vpop.f32.mrb[31].mxu0  ;;  %v1004_v62 = vmax.f32 %v998_v57, 0.0 }
 0xe92   :  { %v1005_v63 = vmax.f32 %v1001_v60, 0.0 }
 0xe94   :  { %v1006_v1 = vpack.c.bf16 %v1005_v63, %v1004_v62 }
 0xe96   :  { %2599 = vmatmul.mubr.msk.bf16.vlgmr.msra.gmra.mrb[28].mxu1 %vm1043_vm7, %v1006_v1 }
 0xe97   :  { %2618 = vmatprep.mubr.msk.bf16.mxu1 %vm2920_vm0, %v2919_v0 }
 0xf69   :  { %v1081_v24 = vpop.f32.mrb[28].mxu1 }
 0xf6a   :  { %v1082_v3 = vadd.f32 %v2348_v2, %v1081_v24  ;;  %v2600_v4 = vpop.f32.mrb[29].mxu1 }
 0xf6b   :  { %v1084_v5 = vpop.f32.mrb[30].mxu1 }
 0xf6c   :  { %v1085_v6 = vadd.f32 %v2348_v2, %v1084_v5  ;;  %v2601_v7 = vpop.f32.mrb[31].mxu1  ;;  %v1088_v8 = vadd.f32 %v1082_v3, %v937_v50 }
 0xf6e   :  { %v1090_v9 = vsel %vm155_vm3, %v1088_v8, 0.0  ;;  %v1089_v10 = vadd.f32 %v1085_v6, %v938_v51 }
 0xf6f   :  { %1091 = vadd.xlane.f32.xlu1 %v1090_v9 }
 0xf70   :  { %v1093_v11 = vsel %vm155_vm3, %v1089_v10, 0.0 }
 0xf73   :  { %1094 = vadd.xlane.f32.xlu1 %v1093_v11 }
 0xffc   :  { %v1092_v12 = vpop.xlane.xlu1 %1091 }
 0xffd   :  { %v1096_v15 = vmul.f32 0.03125, %v1092_v12 }
 0xfff   :  { %v1098_v16 = vsub.f32 %v1088_v8, %v1096_v15 }
0x1000   :  { %v1095_v17 = vpop.xlane.xlu1 %1094 }
0x1001   :  { %v1097_v18 = vmul.f32 0.03125, %v1095_v17  ;;  %v1100_v19 = vmul.f32 %v1098_v16, %v1098_v16 }
0x1003   :  { %v1099_v20 = vsub.f32 %v1089_v10, %v1097_v18  ;;  %v1102_v21 = vsel %vm155_vm3, %v1100_v19, 0.0 }
0x1004   :  { %1103 = vadd.xlane.f32.xlu1 %v1102_v21  ;;  %v2366_v21 = vld [vmem:[%s3521_s7 + $0x10] sm:$0xf] }
0x1005   :  { %v1101_v22 = vmul.f32 %v1099_v20, %v1099_v20 }
0x1007   :  { %v1105_v23 = vsel %vm155_vm3, %v1101_v22, 0.0  ;;  %v1330_v22 = vsel %vm328_vm6, %v2366_v21, 0 }
0x1008   :  { %1106 = vadd.xlane.f32.xlu1 %v1105_v23 }
0x1091   :  { %v1104_v28 = vpop.xlane.xlu1 %1103 }
0x1092   :  { %v1108_v30 = vmul.f32 0.03125, %v1104_v28 }
0x1094   :  { %v1110_v31 = vadd.f32 1e-05, %v1108_v30 }
0x1095   :  { %v1107_v32 = vpop.xlane.xlu1 %1106 }
0x1096   :  { %2797 = vrsqrt.f32 %v1110_v31  ;;  %v1109_v13 = vmul.f32 0.03125, %v1107_v32 }
0x1098   :  { %v1111_v14 = vadd.f32 1e-05, %v1109_v13 }
0x109a   :  { %2799 = vrsqrt.f32 %v1111_v14 }
0x10a0   :  { %v2798_v33 = vpop.eup %2797 }
0x10a1   :  { %v1114_v34 = vmul.f32 %v2798_v33, %v1098_v16 }
0x10a3   :  { %v1120_v37 = vmul.f32 %v2354_v35, %v1114_v34 }
0x10a4   :  { %v2800_v36 = vpop.eup %2799 }
0x10a5   :  { %v1115_v38 = vmul.f32 %v2800_v36, %v1099_v20  ;;  %v3273_v41 = vadd.f32 %v2355_v39, %v1120_v37 }
0x10a7   :  { %v1121_v40 = vmul.f32 %v2354_v35, %v1115_v38 }
0x10a9   :  { %v3275_v42 = vadd.f32 %v2355_v39, %v1121_v40 }
0x10ab   :  { %v1136_v43 = vpack.c.bf16 %v3275_v42, %v3273_v41 }
0x10ad   :  { %2607 = vmatmul.mubr.msk.bf16.vlgmr.msra.gmra.mrb[32].mxu0 %vm155_vm3, %v1136_v43 }
0x10ae   :  { %2612 = vmatprep.mubr.msk.bf16.mxu0 %vm2920_vm0, %v2919_v0 }
0x1180   :  { %v1195_v45 = vpop.f32.mrb[32].mxu0 }
0x1181   :  { %v2608_v46 = vpop.f32.mrb[33].mxu0  ;;  %v1196_v48 = vadd.f32 %v2360_v44, %v1195_v45 }
0x1182   :  { %v1198_v47 = vpop.f32.mrb[34].mxu0 }
0x1183   :  { %v1199_v49 = vadd.f32 %v2360_v44, %v1198_v47  ;;  %v2609_v50 = vpop.f32.mrb[35].mxu0 }
0x1185   :  { %v3285_v51 = vpack.c.bf16 %v1199_v49, %v1196_v48 }
0x1187   :  { %1204 = vrot.lane.b32.xlu0 %v3285_v51, %s2921_s1 }
0x118b   :  { %1381 = vrot.lane.b32.xlu0 %v3285_v51, %s2922_s27 }
0x118f   :  { %1379 = vrot.lane.b32.xlu0 %v3285_v51, %s2923_s28 }
0x11f9   :  { %v1205_v52 = vpop.permute.xlu0 %1204 }
0x11fa   :  { %v1210_v53 = vsel %vm204_vm4, %v1205_v52, 0 }
0x11fb   :  { %2611 = vmatpush3.bf16.xpose.msra.mxu0 %v1210_v53 }
0x11fc   :  { %2622 = vmatprep.subr.bf16.mxu0 %v2919_v0 }
0x11fd   :  { %v1382_v17 = vpop.permute.xlu0 %1381 }
0x11fe   :  { %v1387_v19 = vsel %vm204_vm4, %v1382_v17, 0 }
0x1201   :  { %v1380_v20 = vpop.permute.xlu0 %1379 }
0x1202   :  { %2613 = vmatmul.mubr.msk.bf16.vlgmr.msra.gmra.mrb[36].mxu0 %vm204_vm4, %v3285_v51 }
0x1203   :  { %2624 = vmatprep.mubr.msk.bf16.mxu0 %vm2920_vm0, %v2919_v0  ;;  %2623 = vmatpush3.bf16.msra.mxu0 %v1330_v22 }
0x1204   :  { %2634 = vmatprep.subr.bf16.mxu0 %v2919_v0 }
0x12d5   :  { %v1246_v54 = vpop.f32.mrb[36].mxu0 }
0x12d6   :  { %v1247_v55 = vadd.f32 %v1246_v54, %v3084_v27  ;;  %v2614_v56 = vpop.f32.mrb[37].mxu0 }
0x12d7   :  { %v1249_v57 = vpop.f32.mrb[38].mxu0 }
0x12d8   :  { %v1250_v58 = vadd.f32 %v1249_v57, %v3089_v29  ;;  %v2615_v59 = vpop.f32.mrb[39].mxu0  ;;  %v1253_v60 = vsel %vm252_vm5, %v1247_v55, -inf }
0x12d9   :  { %1254 = vmax.xlane.f32.xlu1 %v1253_v60 }
0x12da   :  { %v1256_v61 = vsel %vm252_vm5, %v1250_v58, -inf }
0x12dd   :  { %1257 = vmax.xlane.f32.xlu1 %v1256_v61 }
0x1366   :  { %v1255_v62 = vpop.xlane.xlu1 %1254 }
0x1367   :  { %v1259_v63 = vsub.f32 %v1247_v55, %v1255_v62 }
0x1369   :  { %v1261_v1 = vmul.f32 1.442695, %v1259_v63  ;;  %v2371_v63 = vld [vmem:[%s3521_s7 + $0x14] sm:$0xf] }
0x136a   :  { %v1258_v2 = vpop.xlane.xlu1 %1257 }
0x136b   :  { %2801 = vpow2.f32 %v1261_v1  ;;  %v1260_v24 = vsub.f32 %v1250_v58, %v1258_v2  ;;  %v1507_v1 = vsel %vm328_vm6, %v2371_v63, 0 }
0x136d   :  { %v1263_v3 = vmul.f32 1.442695, %v1260_v24 }
0x136f   :  { %2803 = vpow2.f32 %v1263_v3 }
0x1375   :  { %v2802_v4 = vpop.eup %2801 }
0x1376   :  { %v1265_v5 = vsel %vm252_vm5, %v2802_v4, 0.0 }
0x1377   :  { %1266 = vadd.xlane.f32.xlu1 %v1265_v5 }
0x1379   :  { %v2804_v6 = vpop.eup %2803 }
0x137a   :  { %v1268_v7 = vsel %vm252_vm5, %v2804_v6, 0.0 }
0x137b   :  { %1269 = vadd.xlane.f32.xlu1 %v1268_v7  ;;  %v3360_v7 = vld [vmem:[%s3516_s2] sm:$0xff] }
0x138c   :  { %1276 = vrot.lane.b32.xlu1 %v3285_v51, %s2917_s5 }
0x1404   :  { %v1267_v8 = vpop.xlane.xlu1 %1266 }
0x1405   :  { %2805 = vrcp.f32 %v1267_v8 }
0x1408   :  { %v1270_v9 = vpop.xlane.xlu1 %1269 }
0x1409   :  { %2807 = vrcp.f32 %v1270_v9 }
0x140c   :  { %v1277_v10 = vpop.permute.xlu1 %1276 }
0x140d   :  { %2617 = vmatpush3.bf16.msra.mxu1 %v1277_v10 }
0x140e   :  { %2628 = vmatprep.subr.bf16.mxu1 %v2919_v0 }
0x140f   :  { %v2806_v11 = vpop.eup %2805 }
0x1410   :  { %v1273_v15 = vmul.f32 %v2806_v11, %v2802_v4  ;;  %v3366_v11 = vld [vmem:[%s3516_s2 + $0x8] sm:$0xff] }
0x1413   :  { %v2808_v12 = vpop.eup %2807 }
0x1414   :  { %v1274_v16 = vmul.f32 %v2808_v12, %v2804_v6 }
0x1416   :  { %v1275_v18 = vpack.c.bf16 %v1274_v16, %v1273_v15 }
0x1418   :  { %2619 = vmatmul.mubr.msk.bf16.vlgmr.msra.gmra.mrb[32].mxu1 %vm252_vm5, %v1275_v18 }
0x1419   :  { %2629 = vmatpush3.bf16.xpose.msra.mxu1 %v1387_v19  ;;  %2630 = vmatprep.mubr.msk.bf16.mxu1 %vm2920_vm0, %v2919_v0 }
0x141a   :  { %2640 = vmatprep.subr.bf16.mxu1 %v2919_v0 }
0x1420   :  { %2631 = vmatmul.mubr.msk.bf16.vlgmr.msra.gmra.mrb[36].mxu1 %vm204_vm4, %v1380_v20 }
0x1421   :  { %2642 = vmatprep.mubr.msk.bf16.mxu1 %vm2920_vm0, %v2919_v0  ;;  %2641 = vmatpush3.bf16.msra.mxu1 %v1507_v1 }
0x1422   :  { %2652 = vmatprep.subr.bf16.mxu1 %v2919_v0 }
0x14eb   :  { %v1316_v23 = vpop.f32.mrb[32].mxu1 }
0x14ec   :  { %v2620_v25 = vpop.f32.mrb[33].mxu1 }
0x14ed   :  { %v1319_v26 = vpop.f32.mrb[34].mxu1 }
0x14ee   :  { %v1323_v28 = vpack.c.bf16 %v1319_v26, %v1316_v23  ;;  %v2621_v30 = vpop.f32.mrb[35].mxu1 }
0x14f0   :  { %2625 = vmatmul.mubr.msk.bf16.vlgmr.msra.gmra.mrb[40].mxu0 %vm204_vm4, %v1323_v28 }
0x14f1   :  { %2636 = vmatprep.mubr.msk.bf16.mxu0 %vm2920_vm0, %v2919_v0 }
0x14f3   :  { %v1423_v31 = vpop.f32.mrb[36].mxu1 }
0x14f4   :  { %v1424_v32 = vadd.f32 %v1423_v31, %v3084_v27  ;;  %v2632_v13 = vpop.f32.mrb[37].mxu1 }
0x14f5   :  { %v1426_v14 = vpop.f32.mrb[38].mxu1 }
0x14f6   :  { %v1427_v33 = vadd.f32 %v1426_v14, %v3089_v29  ;;  %v2633_v34 = vpop.f32.mrb[39].mxu1  ;;  %v1430_v35 = vsel %vm252_vm5, %v1424_v32, -inf }
0x14f7   :  { %1431 = vmax.xlane.f32.xlu0 %v1430_v35 }
0x14f8   :  { %v1433_v36 = vsel %vm252_vm5, %v1427_v33, -inf }
0x14f9   :  { %1434 = vmax.xlane.f32.xlu1 %v1433_v36 }
0x150a   :  { %1554 = vrot.lane.b32.xlu1 %v3285_v51, %s2925_s30 }
0x150e   :  { %1552 = vrot.lane.b32.xlu1 %v3285_v51, %s2926_s13 }
0x1584   :  { %v1432_v37 = vpop.xlane.xlu0 %1431 }
0x1585   :  { %v1436_v38 = vsub.f32 %v1424_v32, %v1432_v37  ;;  %v2368_v32 = vld [vmem:[%s3518_s4 + $0x9] ss:$0 sm:$0xff] }
0x1586   :  { %v1435_v27 = vpop.xlane.xlu1 %1434 }
0x1587   :  { %v1438_v39 = vmul.f32 1.442695, %v1436_v38  ;;  %v1437_v40 = vsub.f32 %v1427_v33, %v1435_v27 }
0x1589   :  { %2809 = vpow2.f32 %v1438_v39  ;;  %v1440_v29 = vmul.f32 1.442695, %v1437_v40 }
0x158a   :  { %v1555_v59 = vpop.permute.xlu1 %1554 }
0x158b   :  { %2811 = vpow2.f32 %v1440_v29  ;;  %v1560_v61 = vsel %vm204_vm4, %v1555_v59, 0 }
0x158e   :  { %v1553_v62 = vpop.permute.xlu1 %1552 }
0x1593   :  { %v2810_v43 = vpop.eup %2809 }
0x1594   :  { %v1442_v44 = vsel %vm252_vm5, %v2810_v43, 0.0 }
0x1595   :  { %v2812_v45 = vpop.eup %2811  ;;  %1443 = vadd.xlane.f32.xlu0 %v1442_v44 }
0x1596   :  { %v1445_v46 = vsel %vm252_vm5, %v2812_v45, 0.0 }
0x1599   :  { %1446 = vadd.xlane.f32.xlu0 %v1445_v46 }
0x15af   :  { %1453 = vrot.lane.b32.xlu0 %v3285_v51, %s2924_s24 }
0x15c3   :  { %v3336_v47 = vpop.f32.mrb[40].mxu0 }
0x15c4   :  { %v2626_v48 = vpop.f32.mrb[41].mxu0  ;;  %v1377_v13 = vadd.f32 %v2368_v32, %v3336_v47 }
0x15c5   :  { %v3338_v49 = vpop.f32.mrb[42].mxu0 }
0x15c6   :  { %v2627_v50 = vpop.f32.mrb[43].mxu0  ;;  %v1378_v33 = vadd.f32 %v2368_v32, %v3338_v49  ;;  %v2375_v49 = vld [vmem:[%s3521_s7 + $0x18] sm:$0xf] }
0x15c7   :  { %v1680_v50 = vsel %vm328_vm6, %v2375_v49, 0 }
0x1622   :  { %v1444_v52 = vpop.xlane.xlu0 %1443 }
0x1623   :  { %2813 = vrcp.f32 %v1444_v52 }
0x1626   :  { %v1447_v53 = vpop.xlane.xlu0 %1446 }
0x1627   :  { %2815 = vrcp.f32 %v1447_v53 }
0x162a   :  { %v1454_v54 = vpop.permute.xlu0 %1453 }
0x162b   :  { %2635 = vmatpush3.bf16.msra.mxu0 %v1454_v54 }
0x162c   :  { %2646 = vmatprep.subr.bf16.mxu0 %v2919_v0 }
0x162d   :  { %v2814_v55 = vpop.eup %2813 }
0x162e   :  { %v1450_v57 = vmul.f32 %v2814_v55, %v2810_v43 }
0x1631   :  { %v2816_v56 = vpop.eup %2815 }
0x1632   :  { %v1451_v58 = vmul.f32 %v2816_v56, %v2812_v45 }
0x1634   :  { %v1452_v60 = vpack.c.bf16 %v1451_v58, %v1450_v57 }
0x1636   :  { %2637 = vmatmul.mubr.msk.bf16.vlgmr.msra.gmra.mrb[44].mxu0 %vm252_vm5, %v1452_v60 }
0x1637   :  { %2647 = vmatpush3.bf16.xpose.msra.mxu0 %v1560_v61  ;;  %2648 = vmatprep.mubr.msk.bf16.mxu0 %vm2920_vm0, %v2919_v0 }
0x1638   :  { %2658 = vmatprep.subr.bf16.mxu0 %v2919_v0 }
0x163e   :  { %2649 = vmatmul.mubr.msk.bf16.vlgmr.msra.gmra.mrb[48].mxu0 %vm204_vm4, %v1553_v62 }
0x163f   :  { %2660 = vmatprep.mubr.msk.bf16.mxu0 %vm2920_vm0, %v2919_v0  ;;  %2659 = vmatpush3.bf16.msra.mxu0 %v1680_v50 }
0x1640   :  { %2670 = vmatprep.subr.bf16.mxu0 %v2919_v0 }
0x1709   :  { %v1493_v2 = vpop.f32.mrb[44].mxu0 }
0x170a   :  { %v2638_v24 = vpop.f32.mrb[45].mxu0 }
0x170b   :  { %v1496_v3 = vpop.f32.mrb[46].mxu0 }
0x170c   :  { %v1500_v4 = vpack.c.bf16 %v1496_v3, %v1493_v2  ;;  %v2639_v5 = vpop.f32.mrb[47].mxu0 }
0x170e   :  { %2643 = vmatmul.mubr.msk.bf16.vlgmr.msra.gmra.mrb[40].mxu1 %vm204_vm4, %v1500_v4 }
0x170f   :  { %2654 = vmatprep.mubr.msk.bf16.mxu1 %vm2920_vm0, %v2919_v0 }
0x1711   :  { %v1596_v6 = vpop.f32.mrb[48].mxu0 }
0x1712   :  { %v1597_v8 = vadd.f32 %v3360_v7, %v1596_v6  ;;  %v2650_v9 = vpop.f32.mrb[49].mxu0 }
0x1713   :  { %v1599_v10 = vpop.f32.mrb[50].mxu0 }
0x1714   :  { %v1600_v12 = vadd.f32 %v3366_v11, %v1599_v10  ;;  %v2651_v15 = vpop.f32.mrb[51].mxu0  ;;  %v1603_v16 = vsel %vm252_vm5, %v1597_v8, -inf }
0x1715   :  { %1604 = vmax.xlane.f32.xlu0 %v1603_v16 }
0x1716   :  { %v1606_v17 = vsel %vm252_vm5, %v1600_v12, -inf }
0x1717   :  { %1607 = vmax.xlane.f32.xlu1 %v1606_v17 }
0x1728   :  { %1626 = vrot.lane.b32.xlu1 %v3285_v51, %s2927_s16 }
0x172c   :  { %1725 = vrot.lane.b32.xlu1 %v3285_v51, %s2929_s17 }
0x17a2   :  { %v1605_v18 = vpop.xlane.xlu0 %1604 }
0x17a3   :  { %v1609_v19 = vsub.f32 %v1597_v8, %v1605_v18 }
0x17a4   :  { %v1608_v20 = vpop.xlane.xlu1 %1607 }
0x17a5   :  { %v1611_v21 = vmul.f32 1.442695, %v1609_v19  ;;  %v1610_v22 = vsub.f32 %v1600_v12, %v1608_v20 }
0x17a7   :  { %2817 = vpow2.f32 %v1611_v21  ;;  %v1613_v23 = vmul.f32 1.442695, %v1610_v22 }
0x17a8   :  { %v1627_v25 = vpop.permute.xlu1 %1626 }
0x17a9   :  { %2819 = vpow2.f32 %v1613_v23  ;;  %2653 = vmatpush3.bf16.msra.mxu1 %v1627_v25 }
0x17aa   :  { %2664 = vmatprep.subr.bf16.mxu1 %v2919_v0 }
0x17ac   :  { %v1726_v48 = vpop.permute.xlu1 %1725 }
0x17b1   :  { %v2818_v26 = vpop.eup %2817 }
0x17b2   :  { %v1615_v28 = vsel %vm252_vm5, %v2818_v26, 0.0 }
0x17b3   :  { %v2820_v30 = vpop.eup %2819  ;;  %1616 = vadd.xlane.f32.xlu0 %v1615_v28 }
0x17b4   :  { %v1618_v31 = vsel %vm252_vm5, %v2820_v30, 0.0 }
0x17b7   :  { %1619 = vadd.xlane.f32.xlu0 %v1618_v31 }
0x17cd   :  { %1727 = vrot.lane.b32.xlu0 %v3285_v51, %s2928_s0 }
0x17e1   :  { %v1543_v14 = vpop.f32.mrb[40].mxu1 }
0x17e2   :  { %v1550_v34 = vadd.f32 %v1543_v14, %v1377_v13  ;;  %v2644_v35 = vpop.f32.mrb[41].mxu1 }
0x17e3   :  { %v1546_v36 = vpop.f32.mrb[42].mxu1 }
0x17e4   :  { %v1551_v37 = vadd.f32 %v1546_v36, %v1378_v33  ;;  %v2645_v38 = vpop.f32.mrb[43].mxu1 }
0x1840   :  { %v1617_v27 = vpop.xlane.xlu0 %1616 }
0x1841   :  { %2821 = vrcp.f32 %v1617_v27 }
0x1844   :  { %v1620_v39 = vpop.xlane.xlu0 %1619 }
0x1845   :  { %2823 = vrcp.f32 %v1620_v39 }
0x1848   :  { %v1728_v45 = vpop.permute.xlu0 %1727 }
0x1849   :  { %v1733_v47 = vsel %vm204_vm4, %v1728_v45, 0 }
0x184b   :  { %v2822_v40 = vpop.eup %2821 }
0x184c   :  { %v1623_v43 = vmul.f32 %v2822_v40, %v2818_v26 }
0x184f   :  { %v2824_v29 = vpop.eup %2823 }
0x1850   :  { %v1624_v44 = vmul.f32 %v2824_v29, %v2820_v30 }
0x1852   :  { %v1625_v46 = vpack.c.bf16 %v1624_v44, %v1623_v43 }
0x1854   :  { %2655 = vmatmul.mubr.msk.bf16.vlgmr.msra.gmra.mrb[44].mxu1 %vm252_vm5, %v1625_v46 }
0x1855   :  { %2665 = vmatpush3.bf16.xpose.msra.mxu1 %v1733_v47  ;;  %2666 = vmatprep.mubr.msk.bf16.mxu1 %vm2920_vm0, %v2919_v0 }
0x1856   :  { %2676 = vmatprep.subr.bf16.mxu1 %v2919_v0 }
0x185c   :  { %2667 = vmatmul.mubr.msk.bf16.vlgmr.msra.gmra.mrb[48].mxu1 %vm204_vm4, %v1726_v48 }
0x185d   :  { %2678 = vmatprep.mubr.msk.bf16.mxu1 %vm2920_vm0, %v2919_v0 }
0x1927   :  { %v1666_v52 = vpop.f32.mrb[44].mxu1 }
0x1928   :  { %v2656_v53 = vpop.f32.mrb[45].mxu1 }
0x1929   :  { %v1669_v54 = vpop.f32.mrb[46].mxu1 }
0x192a   :  { %v1673_v55 = vpack.c.bf16 %v1669_v54, %v1666_v52  ;;  %v2657_v56 = vpop.f32.mrb[47].mxu1  ;;  %v2752_v54 = vld [vmem:[%s3522_s8 + $0x18] sm:$0xff]  }
0x192b   :  { %v2754_v56 = vld [vmem:[%s3523_s9 + $0x28] sm:$0xff]  }
0x192c   :  { %2661 = vmatmul.mubr.msk.bf16.vlgmr.msra.gmra.mrb[52].mxu0 %vm204_vm4, %v1673_v55  ;;  %v2753_v55 = vld [vmem:[%s3523_s9 + $0x20] sm:$0xff]  }
0x192d   :  { %2672 = vmatprep.mubr.msk.bf16.mxu0 %vm2920_vm0, %v2919_v0 }
0x192f   :  { %v1769_v57 = vpop.f32.mrb[48].mxu1 }
0x1930   :  { %v1770_v58 = vadd.f32 %v3360_v7, %v1769_v57  ;;  %v2668_v59 = vpop.f32.mrb[49].mxu1 }
0x1931   :  { %v1772_v60 = vpop.f32.mrb[50].mxu1 }
0x1932   :  { %v1773_v61 = vadd.f32 %v3366_v11, %v1772_v60  ;;  %v2669_v62 = vpop.f32.mrb[51].mxu1  ;;  %v1776_v63 = vsel %vm252_vm5, %v1770_v58, -inf }
0x1933   :  { %1777 = vmax.xlane.f32.xlu1 %v1776_v63 }
0x1934   :  { %v1779_v1 = vsel %vm252_vm5, %v1773_v61, -inf }
0x1935   :  { %1780 = vmax.xlane.f32.xlu0 %v1779_v1 }
0x19c0   :  { %v1778_v2 = vpop.xlane.xlu1 %1777 }
0x19c1   :  { %v1782_v24 = vsub.f32 %v1770_v58, %v1778_v2  ;;  %v2381_v2 = vld [vmem:[%s3518_s4 + $0xa] ss:$0 sm:$0xff] }
0x19c2   :  { %v1781_v3 = vpop.xlane.xlu0 %1780 }
0x19c3   :  { %v1784_v4 = vmul.f32 1.442695, %v1782_v24  ;;  %v1783_v5 = vsub.f32 %v1773_v61, %v1781_v3 }
0x19c5   :  { %2825 = vpow2.f32 %v1784_v4  ;;  %v1786_v6 = vmul.f32 1.442695, %v1783_v5  ;;  %v2382_v5 = vld [vmem:[%s3518_s4 + $0xb] ss:$0 sm:$0xff] }
0x19c7   :  { %2827 = vpow2.f32 %v1786_v6 }
0x19cf   :  { %v2826_v7 = vpop.eup %2825 }
0x19d0   :  { %v1788_v8 = vsel %vm252_vm5, %v2826_v7, 0.0 }
0x19d1   :  { %v2828_v9 = vpop.eup %2827  ;;  %1789 = vadd.xlane.f32.xlu0 %v1788_v8 }
0x19d2   :  { %v1791_v10 = vsel %vm252_vm5, %v2828_v9, 0.0 }
0x19d3   :  { %1792 = vadd.xlane.f32.xlu1 %v1791_v10  ;;  %v2755_v10 = vld [vmem:[%s3523_s9 + $0x30] sm:$0xff]  }
0x19e7   :  { %1799 = vrot.lane.b32.xlu0 %v3285_v51, %s2930_s23  ;;  %v2379_v51 = vld [vmem:[%s3521_s7 + $0x1c] sm:$0xf] }
0x19e8   :  { %v1853_v30 = vsel %vm328_vm6, %v2379_v51, 0 }
0x19e9   :  { %2677 = vmatpush3.bf16.msra.mxu1 %v1853_v30 }
0x19ea   :  { %2690 = vmatprep.subr.bf16.mxu1 %v2919_v0 }
0x19ff   :  { %v1716_v11 = vpop.f32.mrb[52].mxu0 }
0x1a00   :  { %v1723_v12 = vadd.f32 %v1716_v11, %v1550_v34  ;;  %v2662_v15 = vpop.f32.mrb[53].mxu0  ;;  %v2756_v11 = vld [vmem:[%s3523_s9 + $0x38] sm:$0xff]  }
0x1a01   :  { %v1719_v16 = vpop.f32.mrb[54].mxu0 }
0x1a02   :  { %v1724_v17 = vadd.f32 %v1719_v16, %v1551_v37  ;;  %v2663_v18 = vpop.f32.mrb[55].mxu0 }
0x1a5e   :  { %v1790_v19 = vpop.xlane.xlu0 %1789 }
0x1a5f   :  { %2829 = vrcp.f32 %v1790_v19 }
0x1a60   :  { %v1793_v20 = vpop.xlane.xlu1 %1792 }
0x1a61   :  { %2831 = vrcp.f32 %v1793_v20 }
0x1a62   :  { %v1800_v21 = vpop.permute.xlu0 %1799 }
0x1a63   :  { %2671 = vmatpush3.bf16.msra.mxu0 %v1800_v21 }
0x1a64   :  { %2682 = vmatprep.subr.bf16.mxu0 %v2919_v0 }
0x1a69   :  { %v2830_v22 = vpop.eup %2829 }
0x1a6a   :  { %v1796_v25 = vmul.f32 %v2830_v22, %v2826_v7 }
0x1a6b   :  { %v2832_v23 = vpop.eup %2831 }
0x1a6c   :  { %v1797_v26 = vmul.f32 %v2832_v23, %v2828_v9 }
0x1a6e   :  { %v1798_v28 = vpack.c.bf16 %v1797_v26, %v1796_v25  ;;  %v2399_v25 = vld [vmem:[%s3518_s4 + $0xd] ss:$0 sm:$0xff] }
0x1a70   :  { %2673 = vmatmul.mubr.msk.bf16.vlgmr.msra.gmra.mrb[56].mxu0 %vm252_vm5, %v1798_v28 }
0x1a71   :  { %2686 = vmatprep.mubr.msk.bf16.mxu0 %vm2920_vm0, %v2919_v0 }
0x1b43   :  { %v1839_v31 = vpop.f32.mrb[56].mxu0 }
0x1b44   :  { %v2674_v32 = vpop.f32.mrb[57].mxu0 }
0x1b45   :  { %v1842_v13 = vpop.f32.mrb[58].mxu0 }
0x1b46   :  { %v1846_v14 = vpack.c.bf16 %v1842_v13, %v1839_v31  ;;  %v2675_v33 = vpop.f32.mrb[59].mxu0 }
0x1b48   :  { %2679 = vmatmul.mubr.msk.bf16.vlgmr.msra.gmra.mrb[52].mxu1 %vm204_vm4, %v1846_v14 }
0x1b49   :  { %2698 = vmatprep.mubr.msk.bf16.mxu1 %vm2920_vm0, %v2919_v0  ;;  %2691 = vmatpush3.bf16.msra.mxu1 %v2753_v55 }
0x1b4a   :  { %2692 = vmatprep.subr.bf16.mxu1 %v2919_v0 }
0x1b4d   :  { %2693 = vmatpush3.bf16.msra.mxu1 %v2754_v56  ;;  %v2406_v56 = vld [vmem:[%s3518_s4 + $0xf] ss:$0 sm:$0xff] }
0x1b4e   :  { %2694 = vmatprep.subr.bf16.mxu1 %v2919_v0 }
0x1b51   :  { %2695 = vmatpush3.bf16.msra.mxu1 %v2755_v10 }
0x1b52   :  { %2696 = vmatprep.subr.bf16.mxu1 %v2919_v0 }
0x1b55   :  { %2697 = vmatpush3.bf16.msra.mxu1 %v2756_v11 }
0x1b56   :  { %2716 = vmatprep.subr.bf16.mxu1 %v2919_v0 }
0x1c1b   :  { %v1889_v34 = vpop.f32.mrb[52].mxu1 }
0x1c1c   :  { %v1896_v35 = vadd.f32 %v1889_v34, %v1723_v12  ;;  %v2680_v36 = vpop.f32.mrb[53].mxu1  ;;  %v2387_v12 = vld [vmem:[%s3518_s4 + $0xc] ss:$0 sm:$0xff] }
0x1c1d   :  { %v1892_v37 = vpop.f32.mrb[54].mxu1 }
0x1c1e   :  { %v1897_v38 = vadd.f32 %v1892_v37, %v1724_v17  ;;  %v2681_v27 = vpop.f32.mrb[55].mxu1  ;;  %v1898_v39 = vadd.f32 %v1896_v35, %v3273_v41 }
0x1c20   :  { %v1900_v40 = vsel %vm155_vm3, %v1898_v39, 0.0  ;;  %v1899_v29 = vadd.f32 %v1897_v38, %v3275_v42  ;;  %v2751_v42 = vld [vmem:[%s3522_s8 + $0x10] sm:$0xff]  }
0x1c21   :  { %1901 = vadd.xlane.f32.xlu1 %v1900_v40  ;;  %2683 = vmatpush3.bf16.msra.mxu0 %v2751_v42 }
0x1c22   :  { %v1903_v43 = vsel %vm155_vm3, %v1899_v29, 0.0  ;;  %2684 = vmatprep.subr.bf16.mxu0 %v2919_v0 }
0x1c25   :  { %1904 = vadd.xlane.f32.xlu1 %v1903_v43  ;;  %2685 = vmatpush3.bf16.msra.mxu0 %v2752_v54 }
0x1c26   :  { %2702 = vmatprep.subr.bf16.mxu0 %v2919_v0 }
0x1cae   :  { %v1902_v44 = vpop.xlane.xlu1 %1901 }
0x1caf   :  { %v1906_v45 = vmul.f32 0.03125, %v1902_v44 }
0x1cb1   :  { %v1908_v46 = vsub.f32 %v1898_v39, %v1906_v45 }
0x1cb2   :  { %v1905_v47 = vpop.xlane.xlu1 %1904 }
0x1cb3   :  { %v1907_v48 = vmul.f32 0.03125, %v1905_v47  ;;  %v1910_v49 = vmul.f32 %v1908_v46, %v1908_v46 }
0x1cb5   :  { %v1909_v50 = vsub.f32 %v1899_v29, %v1907_v48  ;;  %v1912_v52 = vsel %vm155_vm3, %v1910_v49, 0.0 }
0x1cb6   :  { %1913 = vadd.xlane.f32.xlu1 %v1912_v52 }
0x1cb7   :  { %v1911_v53 = vmul.f32 %v1909_v50, %v1909_v50 }
0x1cb9   :  { %v1915_v41 = vsel %vm155_vm3, %v1911_v53, 0.0 }
0x1cba   :  { %1916 = vadd.xlane.f32.xlu1 %v1915_v41  ;;  %v2405_v41 = vld [vmem:[%s3518_s4 + $0xe] ss:$0 sm:$0xff] }
0x1d43   :  { %v1914_v57 = vpop.xlane.xlu1 %1913 }
0x1d44   :  { %v1918_v58 = vmul.f32 0.03125, %v1914_v57 }
0x1d46   :  { %v1920_v59 = vadd.f32 1e-05, %v1918_v58 }
0x1d47   :  { %v1917_v60 = vpop.xlane.xlu1 %1916 }
0x1d48   :  { %2833 = vrsqrt.f32 %v1920_v59  ;;  %v1919_v61 = vmul.f32 0.03125, %v1917_v60 }
0x1d4a   :  { %v1921_v62 = vadd.f32 1e-05, %v1919_v61  ;;  %v2128_v61 = vld [vmem:[%s3517_s3] sm:$0x1] }
0x1d4c   :  { %2835 = vrsqrt.f32 %v1921_v62  ;;  %v2757_v62 = vld [vmem:[%s3524_s10] sm:$0xff]  }
0x1d52   :  { %v2834_v63 = vpop.eup %2833 }
0x1d53   :  { %v1924_v1 = vmul.f32 %v2834_v63, %v1908_v46  ;;  %v2758_v63 = vld [vmem:[%s3524_s10 + $0x8] sm:$0xff]  }
0x1d55   :  { %v1930_v3 = vmul.f32 %v2381_v2, %v1924_v1 }
0x1d56   :  { %v2836_v24 = vpop.eup %2835 }
0x1d57   :  { %v1925_v4 = vmul.f32 %v2836_v24, %v1909_v50  ;;  %v1936_v7 = vadd.f32 %v2382_v5, %v1930_v3 }
0x1d59   :  { %v1931_v6 = vmul.f32 %v2381_v2, %v1925_v4 }
0x1d5b   :  { %v1937_v8 = vadd.f32 %v2382_v5, %v1931_v6  ;;  %v2759_v5 = vld [vmem:[#allocation5] sm:$0xff]   ;;  %v2760_v6 = vld [vmem:[#allocation5 + $0x8] sm:$0xff]  }
0x1d5d   :  { %v1938_v9 = vpack.c.bf16 %v1937_v8, %v1936_v7 }
0x1d5f   :  { %2687 = vmatmul.mubr.msk.bf16.vlgmr.msra.gmra.mrb[60].mxu0 %vm155_vm3, %v1938_v9 }
0x1d60   :  { %2704 = vmatprep.mubr.msk.bf16.mxu0 %vm2920_vm0, %v2919_v0 }
0x1e32   :  { %v1997_v15 = vpop.f32.mrb[60].mxu0 }
0x1e33   :  { %v1998_v16 = vadd.f32 %v2387_v12, %v1997_v15  ;;  %v2688_v17 = vpop.f32.mrb[61].mxu0 }
0x1e34   :  { %v2000_v18 = vpop.f32.mrb[62].mxu0  ;;  %v2412_v17 = vld [vmem:[%s3518_s4 + $0x11] ss:$0 sm:$0xff] }
0x1e35   :  { %v2001_v19 = vadd.f32 %v2387_v12, %v2000_v18  ;;  %v2689_v20 = vpop.f32.mrb[63].mxu0  ;;  %v2004_v21 = vmax.f32 %v1998_v16, 0.0 }
0x1e37   :  { %v2005_v22 = vmax.f32 %v2001_v19, 0.0 }
0x1e39   :  { %v2006_v23 = vpack.c.bf16 %v2005_v22, %v2004_v21 }
0x1e3b   :  { %2699 = vmatmul.mubr.msk.bf16.vlgmr.msra.gmra.mrb[56].mxu1 %vm1043_vm7, %v2006_v23 }
0x1e3c   :  { %2720 = vmatprep.mubr.msk.bf16.mxu1 %vm2920_vm0, %v2919_v0  ;;  %2717 = vmatpush3.bf16.msra.mxu1 %v2759_v5 }
0x1e3d   :  { %2718 = vmatprep.subr.bf16.mxu1 %v2919_v0 }
0x1e40   :  { %2719 = vmatpush3.bf16.msra.mxu1 %v2760_v6 }
0x1f0e   :  { %v2081_v26 = vpop.f32.mrb[56].mxu1 }
0x1f0f   :  { %v2082_v28 = vadd.f32 %v2399_v25, %v2081_v26  ;;  %v2700_v51 = vpop.f32.mrb[57].mxu1 }
0x1f10   :  { %v2084_v30 = vpop.f32.mrb[58].mxu1 }
0x1f11   :  { %v2085_v31 = vadd.f32 %v2399_v25, %v2084_v30  ;;  %v2701_v32 = vpop.f32.mrb[59].mxu1  ;;  %v2088_v13 = vadd.f32 %v2082_v28, %v1936_v7  ;;  %v2408_v7 = vld [vmem:[%s3518_s4 + $0x10] ss:$0 sm:$0xff] }
0x1f13   :  { %v2090_v14 = vsel %vm155_vm3, %v2088_v13, 0.0  ;;  %v2089_v33 = vadd.f32 %v2085_v31, %v1937_v8 }
0x1f14   :  { %2091 = vadd.xlane.f32.xlu1 %v2090_v14 }
0x1f15   :  { %v2093_v34 = vsel %vm155_vm3, %v2089_v33, 0.0 }
0x1f18   :  { %2094 = vadd.xlane.f32.xlu1 %v2093_v34 }
0x1fa1   :  { %v2092_v35 = vpop.xlane.xlu1 %2091 }
0x1fa2   :  { %v2096_v36 = vmul.f32 0.03125, %v2092_v35 }
0x1fa4   :  { %v2098_v37 = vsub.f32 %v2088_v13, %v2096_v36 }
0x1fa5   :  { %v2095_v38 = vpop.xlane.xlu1 %2094 }
0x1fa6   :  { %v2097_v27 = vmul.f32 0.03125, %v2095_v38  ;;  %v2100_v39 = vmul.f32 %v2098_v37, %v2098_v37 }
0x1fa8   :  { %v2099_v40 = vsub.f32 %v2089_v33, %v2097_v27  ;;  %v2102_v29 = vsel %vm155_vm3, %v2100_v39, 0.0 }
0x1fa9   :  { %2103 = vadd.xlane.f32.xlu0 %v2102_v29 }
0x1faa   :  { %v2101_v43 = vmul.f32 %v2099_v40, %v2099_v40 }
0x1fac   :  { %v2105_v44 = vsel %vm155_vm3, %v2101_v43, 0.0 }
0x1fad   :  { %2106 = vadd.xlane.f32.xlu1 %v2105_v44 }
0x2036   :  { %v2104_v45 = vpop.xlane.xlu0 %2103 }
0x2037   :  { %v2108_v46 = vmul.f32 0.03125, %v2104_v45 }
0x2039   :  { %v2110_v47 = vadd.f32 1e-05, %v2108_v46 }
0x203a   :  { %v2107_v48 = vpop.xlane.xlu1 %2106 }
0x203b   :  { %2837 = vrsqrt.f32 %v2110_v47  ;;  %v2109_v49 = vmul.f32 0.03125, %v2107_v48 }
0x203d   :  { %v2111_v50 = vadd.f32 1e-05, %v2109_v49 }
0x203f   :  { %2839 = vrsqrt.f32 %v2111_v50 }
0x2045   :  { %v2838_v52 = vpop.eup %2837 }
0x2046   :  { %v2114_v53 = vmul.f32 %v2838_v52, %v2098_v37 }
0x2048   :  { %v2120_v55 = vmul.f32 %v2405_v41, %v2114_v53 }
0x2049   :  { %v2840_v42 = vpop.eup %2839 }
0x204a   :  { %v2115_v54 = vmul.f32 %v2840_v42, %v2099_v40  ;;  %v2126_v58 = vadd.f32 %v2406_v56, %v2120_v55 }
0x204c   :  { %v2121_v57 = vmul.f32 %v2405_v41, %v2115_v54 }
0x204e   :  { %v2127_v59 = vadd.f32 %v2406_v56, %v2121_v57 }
0x2050   :  { %v2129_v60 = vpack.c.bf16 %v2127_v59, %v2126_v58 }
0x2052   :  { %2703 = vmatpush3.bf16.msra.mxu0 %v2129_v60 }
0x2053   :  { %2708 = vmatprep.subr.bf16.mxu0 %v2919_v0 }
0x2055   :  { %2705 = vmatmul.mubr.msk.bf16.vlgmr.msra.gmra.mrb[64].mxu0 %vm252_vm5, %v2128_v61 }
0x2056   :  { %2709 = vmatpush3.bf16.msra.mxu0 %v2757_v62  ;;  %2712 = vmatprep.mubr.msk.bf16.mxu0 %vm2920_vm0, %v2919_v0 }
0x2057   :  { %2710 = vmatprep.subr.bf16.mxu0 %v2919_v0 }
0x205a   :  { %2711 = vmatpush3.bf16.msra.mxu0 %v2758_v63 }
0x2128   :  { %v2167_v1 = vpop.f32.mrb[64].mxu0 }
0x2129   :  { %v2175_v2 = vpack.c.bf16 %v2167_v1, %v2167_v1  ;;  %v2706_v24 = vpop.f32.mrb[65].mxu0 }
0x212a   :  { %v2170_v3 = vpop.f32.mrb[66].mxu0 }
0x212b   :  { %v2707_v4 = vpop.f32.mrb[67].mxu0  ;;  %2713 = vmatmul.mubr.msk.bf16.vlgmr.msra.gmra.mrb[68].mxu0 %vm155_vm3, %v2175_v2 }
0x21fe   :  { %v2233_v8 = vpop.f32.mrb[68].mxu0 }
0x21ff   :  { %v2234_v9 = vadd.f32 %v2408_v7, %v2233_v8  ;;  %v2714_v10 = vpop.f32.mrb[69].mxu0 }
0x2200   :  { %v2236_v11 = vpop.f32.mrb[70].mxu0 }
0x2201   :  { %v2239_v12 = vmax.f32 %v2234_v9, 0.0  ;;  %v2715_v15 = vpop.f32.mrb[71].mxu0 }
0x2203   :  { %v2240_v16 = vpack.c.bf16 %v2239_v12, %v2239_v12 }
0x2205   :  { %2721 = vmatmul.mubr.msk.bf16.vlgmr.msra.gmra.mrb[60].mxu1 %vm155_vm3, %v2240_v16 }
0x22d8   :  { %v2298_v0 = vpop.f32.mrb[60].mxu1 }
0x22d9   :  { %v2299_v18 = vadd.f32 %v2412_v17, %v2298_v0  ;;  %v2722_v19 = vpop.f32.mrb[61].mxu1 }
0x22da   :  { %v2301_v20 = vpop.f32.mrb[62].mxu1 }
0x22db   :  { %2304 = vst [vmem:[#allocation7] sm:$0x3] %v2299_v18  ;;  %v2723_v21 = vpop.f32.mrb[63].mxu1 }
0x22dc   :  { %2898 = shalt.err (!%p2895_p6)
}
0x22dd   :  { %s2899_s4 = scalar_lea.hbm %s3526_s12, 32 }
0x22de   :  { %p2900_p7 = scmp.ne.s32.totalorder %s3526_s12, %s2899_s4  ;;  %p2903_p8 = scmp.lt.u32.totalorder %s2899_s4, %s3526_s12 }
0x22e0   :  { %p2905_p9 = pnand %p2903_p8, %p2900_p7 }
0x22e2   :  { %2908 = shalt.err (!%p2905_p9)
}
0x22e3   :  { %2314 = dma.vmem_to_hbm [thread:$0]  %s2312_s14, 32, %s3526_s12, [#allocation4]  }
0x22e4   :  { %2913 = dma.done.wait [#allocation4], 32  }
0x22e5   :  { %2914 = vsyncadd [#allocation4], 4294967264 }
0x22e6   :  { %2318 = vsyncpa [#allocation3], 1 }
0x22e7   :  { %2319 = vsyncpa [#allocation6], 1 }
0x22e8   :  { %2320 = vsyncpa [#allocation4], 1 }

</bundles_post_ra>
